<compile_context>
chip_gen: v7x
topology: tpu7x:2x2x1
jax: 0.10.0
libtpu: 0.0.40
codegen_flags: <defaults>
</compile_context>

<pallas_src>
import functools

import jax
import jax.numpy as jnp
from jax.experimental import pallas as pl
from jax.experimental.pallas import tpu as pltpu

# Hidden sizes from the PyTorch module.
H1, H2, H3, H4, H_OUT = 896, 512, 256, 64, 1

MAX_BATCH_TILE = 2048   # multiple of 256; ~25-30 MiB live set -> fits v7x 64 MiB VMEM
MIN_GRID_STEPS = 2      # keep >=2 grid steps for large batches (v7x megacore)


def _round_up(x, m):
    return (x + m - 1) // m * m


def _choose_batch_tile(batch):
    """MXU-friendly batch tile with >=2 grid steps once the batch is large."""
    if batch <= 512:
        # Single tile, rows rounded to the 8-sublane granule.
        return _round_up(batch, 8)
    tile = _round_up(pl.cdiv(batch, MIN_GRID_STEPS), 256)
    return min(tile, MAX_BATCH_TILE)


def _mlp_kernel(x_ref,
                w1_ref, b1_ref,
                w2_ref, b2_ref,
                w3_ref, b3_ref,
                w4_ref, b4_ref,
                w5_ref, b5_ref,
                o_ref):
    """Fused 5-layer MLP forward on one batch tile.

    Dot inputs are cast to bf16 (explicit version of the MXU's default f32
    truncation), accumulation / bias-add / ReLU stay in f32.
    """

    def dense(a_f32, w_ref, b_ref):
        acc = jnp.dot(a_f32.astype(jnp.bfloat16), w_ref[...],
                      preferred_element_type=jnp.float32)
        return acc + b_ref[...]

    h = jnp.maximum(dense(x_ref[...], w1_ref, b1_ref), 0.0)
    h = jnp.maximum(dense(h, w2_ref, b2_ref), 0.0)
    h = jnp.maximum(dense(h, w3_ref, b3_ref), 0.0)
    h = jnp.maximum(dense(h, w4_ref, b4_ref), 0.0)
    o_ref[...] = dense(h, w5_ref, b5_ref).astype(o_ref.dtype)


@functools.partial(jax.jit, static_argnames=("batch_tile",))
def mlp_forward(x, params, *, batch_tile=None):
    """x: (B, in_features) f32.  params: dict of prepared (w_i, b_i).

    Returns (B, 1) in x.dtype.  No host-side padding / slicing of x or the
    output: Pallas handles the ragged boundary tile and the lane-1 output.
    """
    B, F = x.shape
    if batch_tile is None:
        batch_tile = _choose_batch_tile(B)
    batch_tile = max(8, _round_up(batch_tile, 8))

    grid = (pl.cdiv(B, batch_tile),)

    w1, b1 = params["w1"], params["b1"]
    w2, b2 = params["w2"], params["b2"]
    w3, b3 = params["w3"], params["b3"]
    w4, b4 = params["w4"], params["b4"]
    w5, b5 = params["w5"], params["b5"]

    def full_spec(shape):
        # Whole-array block with a constant index_map: the weight/bias stays
        # VMEM-resident across all batch tiles (no re-DMA).
        return pl.BlockSpec(shape, lambda i: (0, 0))

    out = pl.pallas_call(
        _mlp_kernel,
        out_shape=jax.ShapeDtypeStruct((B, H_OUT), x.dtype),
        grid_spec=pltpu.PrefetchScalarGridSpec(
            num_scalar_prefetch=0,
            grid=grid,
            in_specs=[
                # x tile: last dim == full array dim (no K padding needed).
                pl.BlockSpec((batch_tile, F), lambda i: (i, 0)),
                full_spec(w1.shape), full_spec(b1.shape),
                full_spec(w2.shape), full_spec(b2.shape),
                full_spec(w3.shape), full_spec(b3.shape),
                full_spec(w4.shape), full_spec(b4.shape),
                full_spec(w5.shape), full_spec(b5.shape),
            ],
            # Output written as (bt, 1) directly; Pallas drops OOB rows of the
            # ragged last tile, so no host-side slice is needed.
            out_specs=pl.BlockSpec((batch_tile, H_OUT), lambda i: (i, 0)),
        ),
        compiler_params=pltpu.CompilerParams(
            # Batch tiles are independent -> shard grid steps across
            # TensorCores on v7x (>=2 steps guaranteed for B > 512).
            dimension_semantics=("parallel",),
            # Live set at bt=2048 is ~25-30 MiB; 48 MiB leaves headroom and
            # stays under v7x's 64 MiB physical VMEM.
            vmem_limit_bytes=48 * 1024 * 1024,
        ),
    )(x, w1, b1, w2, b2, w3, b3, w4, b4, w5, b5)

    return out


def init_params(key, in_features):
    """Deterministic f32 parameter init (shapes match the PyTorch module)."""
    dims = [(in_features, H1), (H1, H2), (H2, H3), (H3, H4), (H4, H_OUT)]
    params = {}
    for idx, (d_in, d_out) in enumerate(dims, start=1):
        key, kw, kb = jax.random.split(key, 3)
        scale = 1.0 / jnp.sqrt(jnp.float32(d_in))
        params[f"w{idx}"] = jax.random.uniform(
            kw, (d_in, d_out), jnp.float32, -scale, scale)
        params[f"b{idx}"] = jax.random.uniform(
            kb, (1, d_out), jnp.float32, -scale, scale)
    return params


def prepare_params(params):
    """One-time (outside the per-call path) prep: bf16 weights, f32 biases."""
    prepped = {}
    for name, value in params.items():
        if name.startswith("w"):
            prepped[name] = value.astype(jnp.bfloat16)
        else:
            prepped[name] = value.astype(jnp.float32)
    return prepped


def mlp_reference(x, params):
    """Pure-JAX reference of the PyTorch forward (same prepared params)."""
    h = x
    for idx in range(1, 5):
        h = jnp.maximum(h @ params[f"w{idx}"] + params[f"b{idx}"], 0.0)
    return h @ params["w5"] + params["b5"]


if __name__ == "__main__":
    key = jax.random.PRNGKey(0)
    in_features = 32   # small synthetic feature count

    key, kx, kp = jax.random.split(key, 3)
    params = prepare_params(init_params(kp, in_features))

    # Two batch sizes: single-tile path and multi-tile ragged path.
    for batch in (64, 600):
        kx, sub = jax.random.split(kx)
        x = jax.random.normal(sub, (batch, in_features), jnp.float32)

        out = jax.block_until_ready(mlp_forward(x, params))
        ref = mlp_reference(x, params)

        assert out.shape == (batch, 1), out.shape
        assert jnp.allclose(out, ref, atol=2e-2, rtol=2e-2), (
            "mismatch vs reference, max abs diff = "
            f"{float(jnp.max(jnp.abs(out - ref)))}")

    print("KERNEL_OK")
</pallas_src>

<mosaic_0001>
module attributes {stable_mosaic.version = 11 : i64} {
  func.func @_mlp_kernel(%arg0: i32, %arg1: memref<64x32xf32, #tpu.memory_space<vmem>>, %arg2: memref<32x896xbf16, #tpu.memory_space<vmem>>, %arg3: memref<1x896xf32, #tpu.memory_space<vmem>>, %arg4: memref<896x512xbf16, #tpu.memory_space<vmem>>, %arg5: memref<1x512xf32, #tpu.memory_space<vmem>>, %arg6: memref<512x256xbf16, #tpu.memory_space<vmem>>, %arg7: memref<1x256xf32, #tpu.memory_space<vmem>>, %arg8: memref<256x64xbf16, #tpu.memory_space<vmem>>, %arg9: memref<1x64xf32, #tpu.memory_space<vmem>>, %arg10: memref<64x1xbf16, #tpu.memory_space<vmem>>, %arg11: memref<1x1xf32, #tpu.memory_space<vmem>>, %arg12: memref<64x1xf32, #tpu.memory_space<vmem>>) attributes {dimension_semantics = [#tpu.dimension_semantics<parallel>], iteration_bounds = array<i64: 1>, scalar_prefetch = 0 : i64, scratch_operands = 0 : i64, tpu.core_type = #tpu.core_type<tc>, window_params = [{transform_indices = @transform_0, window_bounds = array<i64: 64, 32>}, {pipeline_mode = #tpu.pipeline_mode<synchronous>, transform_indices = @transform_1, window_bounds = array<i64: 32, 896>}, {pipeline_mode = #tpu.pipeline_mode<synchronous>, transform_indices = @transform_2, window_bounds = array<i64: 1, 896>}, {pipeline_mode = #tpu.pipeline_mode<synchronous>, transform_indices = @transform_3, window_bounds = array<i64: 896, 512>}, {pipeline_mode = #tpu.pipeline_mode<synchronous>, transform_indices = @transform_4, window_bounds = array<i64: 1, 512>}, {pipeline_mode = #tpu.pipeline_mode<synchronous>, transform_indices = @transform_5, window_bounds = array<i64: 512, 256>}, {pipeline_mode = #tpu.pipeline_mode<synchronous>, transform_indices = @transform_6, window_bounds = array<i64: 1, 256>}, {pipeline_mode = #tpu.pipeline_mode<synchronous>, transform_indices = @transform_7, window_bounds = array<i64: 256, 64>}, {pipeline_mode = #tpu.pipeline_mode<synchronous>, transform_indices = @transform_8, window_bounds = array<i64: 1, 64>}, {pipeline_mode = #tpu.pipeline_mode<synchronous>, transform_indices = @transform_9, window_bounds = array<i64: 64, 1>}, {pipeline_mode = #tpu.pipeline_mode<synchronous>, transform_indices = @transform_10, window_bounds = array<i64: 1, 1>}, {transform_indices = @transform_11, window_bounds = array<i64: 64, 1>}]} {
    %c0 = arith.constant 0 : index
    %c0_0 = arith.constant 0 : index
    %0 = vector.load %arg1[%c0, %c0_0] : memref<64x32xf32, #tpu.memory_space<vmem>>, vector<64x32xf32>
    %1 = arith.truncf %0 : vector<64x32xf32> to vector<64x32xbf16>
    %c0_1 = arith.constant 0 : index
    %c0_2 = arith.constant 0 : index
    %2 = vector.load %arg2[%c0_1, %c0_2] : memref<32x896xbf16, #tpu.memory_space<vmem>>, vector<32x896xbf16>
    %cst = arith.constant dense<0.000000e+00> : vector<64x896xf32>
    %3 = tpu.matmul %1, %2, %cst {dimension_numbers = #tpu.dot_dimension_numbers<[1], [0], [0], [1], [0, 0, 1, 1], [], []>} : vector<64x32xbf16>, vector<32x896xbf16>, vector<64x896xf32> -> vector<64x896xf32>
    %c0_3 = arith.constant 0 : index
    %c0_4 = arith.constant 0 : index
    %4 = vector.load %arg3[%c0_3, %c0_4] : memref<1x896xf32, #tpu.memory_space<vmem>>, vector<1x896xf32>
    %5 = vector.broadcast %4 : vector<1x896xf32> to vector<64x896xf32>
    %6 = arith.addf %3, %5 : vector<64x896xf32>
    %cst_5 = arith.constant 0.000000e+00 : f32
    %7 = vector.broadcast %cst_5 : f32 to vector<64x896xf32>
    %8 = arith.maximumf %6, %7 : vector<64x896xf32>
    %9 = arith.truncf %8 : vector<64x896xf32> to vector<64x896xbf16>
    %c0_6 = arith.constant 0 : index
    %c0_7 = arith.constant 0 : index
    %10 = vector.load %arg4[%c0_6, %c0_7] : memref<896x512xbf16, #tpu.memory_space<vmem>>, vector<896x512xbf16>
    %cst_8 = arith.constant dense<0.000000e+00> : vector<64x512xf32>
    %11 = tpu.matmul %9, %10, %cst_8 {dimension_numbers = #tpu.dot_dimension_numbers<[1], [0], [0], [1], [0, 0, 1, 1], [], []>} : vector<64x896xbf16>, vector<896x512xbf16>, vector<64x512xf32> -> vector<64x512xf32>
    %c0_9 = arith.constant 0 : index
    %c0_10 = arith.constant 0 : index
    %12 = vector.load %arg5[%c0_9, %c0_10] : memref<1x512xf32, #tpu.memory_space<vmem>>, vector<1x512xf32>
    %13 = vector.broadcast %12 : vector<1x512xf32> to vector<64x512xf32>
    %14 = arith.addf %11, %13 : vector<64x512xf32>
    %cst_11 = arith.constant 0.000000e+00 : f32
    %15 = vector.broadcast %cst_11 : f32 to vector<64x512xf32>
    %16 = arith.maximumf %14, %15 : vector<64x512xf32>
    %17 = arith.truncf %16 : vector<64x512xf32> to vector<64x512xbf16>
    %c0_12 = arith.constant 0 : index
    %c0_13 = arith.constant 0 : index
    %18 = vector.load %arg6[%c0_12, %c0_13] : memref<512x256xbf16, #tpu.memory_space<vmem>>, vector<512x256xbf16>
    %cst_14 = arith.constant dense<0.000000e+00> : vector<64x256xf32>
    %19 = tpu.matmul %17, %18, %cst_14 {dimension_numbers = #tpu.dot_dimension_numbers<[1], [0], [0], [1], [0, 0, 1, 1], [], []>} : vector<64x512xbf16>, vector<512x256xbf16>, vector<64x256xf32> -> vector<64x256xf32>
    %c0_15 = arith.constant 0 : index
    %c0_16 = arith.constant 0 : index
    %20 = vector.load %arg7[%c0_15, %c0_16] : memref<1x256xf32, #tpu.memory_space<vmem>>, vector<1x256xf32>
    %21 = vector.broadcast %20 : vector<1x256xf32> to vector<64x256xf32>
    %22 = arith.addf %19, %21 : vector<64x256xf32>
    %cst_17 = arith.constant 0.000000e+00 : f32
    %23 = vector.broadcast %cst_17 : f32 to vector<64x256xf32>
    %24 = arith.maximumf %22, %23 : vector<64x256xf32>
    %25 = arith.truncf %24 : vector<64x256xf32> to vector<64x256xbf16>
    %c0_18 = arith.constant 0 : index
    %c0_19 = arith.constant 0 : index
    %26 = vector.load %arg8[%c0_18, %c0_19] : memref<256x64xbf16, #tpu.memory_space<vmem>>, vector<256x64xbf16>
    %cst_20 = arith.constant dense<0.000000e+00> : vector<64x64xf32>
    %27 = tpu.matmul %25, %26, %cst_20 {dimension_numbers = #tpu.dot_dimension_numbers<[1], [0], [0], [1], [0, 0, 1, 1], [], []>} : vector<64x256xbf16>, vector<256x64xbf16>, vector<64x64xf32> -> vector<64x64xf32>
    %c0_21 = arith.constant 0 : index
    %c0_22 = arith.constant 0 : index
    %28 = vector.load %arg9[%c0_21, %c0_22] : memref<1x64xf32, #tpu.memory_space<vmem>>, vector<1x64xf32>
    %29 = vector.broadcast %28 : vector<1x64xf32> to vector<64x64xf32>
    %30 = arith.addf %27, %29 : vector<64x64xf32>
    %cst_23 = arith.constant 0.000000e+00 : f32
    %31 = vector.broadcast %cst_23 : f32 to vector<64x64xf32>
    %32 = arith.maximumf %30, %31 : vector<64x64xf32>
    %33 = arith.truncf %32 : vector<64x64xf32> to vector<64x64xbf16>
    %c0_24 = arith.constant 0 : index
    %c0_25 = arith.constant 0 : index
    %34 = vector.load %arg10[%c0_24, %c0_25] : memref<64x1xbf16, #tpu.memory_space<vmem>>, vector<64x1xbf16>
    %cst_26 = arith.constant dense<0.000000e+00> : vector<64x1xf32>
    %35 = tpu.matmul %33, %34, %cst_26 {dimension_numbers = #tpu.dot_dimension_numbers<[1], [0], [0], [1], [0, 0, 1, 1], [], []>} : vector<64x64xbf16>, vector<64x1xbf16>, vector<64x1xf32> -> vector<64x1xf32>
    %c0_27 = arith.constant 0 : index
    %c0_28 = arith.constant 0 : index
    %36 = vector.load %arg11[%c0_27, %c0_28] : memref<1x1xf32, #tpu.memory_space<vmem>>, vector<1x1xf32>
    %37 = vector.broadcast %36 : vector<1x1xf32> to vector<64x1xf32>
    %38 = arith.addf %35, %37 : vector<64x1xf32>
    %c0_29 = arith.constant 0 : index
    %c0_30 = arith.constant 0 : index
    %39 = vector.load %arg12[%c0_29, %c0_30] : memref<64x1xf32, #tpu.memory_space<vmem>>, vector<64x1xf32>
    tpu.vector_store %arg12[%c0_29, %c0_30], %38 {strides = array<i32>} : memref<64x1xf32, #tpu.memory_space<vmem>>, vector<64x1xf32>,
    return
  }
  func.func @transform_0(%arg0: i32) -> (i32, i32) {
    %c0_i32 = arith.constant 0 : i32
    %c0_i32_0 = arith.constant 0 : i32
    return %arg0, %c0_i32 : i32, i32
  }
  func.func @transform_1(%arg0: i32) -> (i32, i32) {
    %c0_i32 = arith.constant 0 : i32
    %c0_i32_0 = arith.constant 0 : i32
    %c0_i32_1 = arith.constant 0 : i32
    return %c0_i32, %c0_i32_0 : i32, i32
  }
  func.func @transform_2(%arg0: i32) -> (i32, i32) {
    %c0_i32 = arith.constant 0 : i32
    %c0_i32_0 = arith.constant 0 : i32
    %c0_i32_1 = arith.constant 0 : i32
    return %c0_i32, %c0_i32_0 : i32, i32
  }
  func.func @transform_3(%arg0: i32) -> (i32, i32) {
    %c0_i32 = arith.constant 0 : i32
    %c0_i32_0 = arith.constant 0 : i32
    %c0_i32_1 = arith.constant 0 : i32
    return %c0_i32, %c0_i32_0 : i32, i32
  }
  func.func @transform_4(%arg0: i32) -> (i32, i32) {
    %c0_i32 = arith.constant 0 : i32
    %c0_i32_0 = arith.constant 0 : i32
    %c0_i32_1 = arith.constant 0 : i32
    return %c0_i32, %c0_i32_0 : i32, i32
  }
  func.func @transform_5(%arg0: i32) -> (i32, i32) {
    %c0_i32 = arith.constant 0 : i32
    %c0_i32_0 = arith.constant 0 : i32
    %c0_i32_1 = arith.constant 0 : i32
    return %c0_i32, %c0_i32_0 : i32, i32
  }
  func.func @transform_6(%arg0: i32) -> (i32, i32) {
    %c0_i32 = arith.constant 0 : i32
    %c0_i32_0 = arith.constant 0 : i32
    %c0_i32_1 = arith.constant 0 : i32
    return %c0_i32, %c0_i32_0 : i32, i32
  }
  func.func @transform_7(%arg0: i32) -> (i32, i32) {
    %c0_i32 = arith.constant 0 : i32
    %c0_i32_0 = arith.constant 0 : i32
    %c0_i32_1 = arith.constant 0 : i32
    return %c0_i32, %c0_i32_0 : i32, i32
  }
  func.func @transform_8(%arg0: i32) -> (i32, i32) {
    %c0_i32 = arith.constant 0 : i32
    %c0_i32_0 = arith.constant 0 : i32
    %c0_i32_1 = arith.constant 0 : i32
    return %c0_i32, %c0_i32_0 : i32, i32
  }
  func.func @transform_9(%arg0: i32) -> (i32, i32) {
    %c0_i32 = arith.constant 0 : i32
    %c0_i32_0 = arith.constant 0 : i32
    %c0_i32_1 = arith.constant 0 : i32
    return %c0_i32, %c0_i32_0 : i32, i32
  }
  func.func @transform_10(%arg0: i32) -> (i32, i32) {
    %c0_i32 = arith.constant 0 : i32
    %c0_i32_0 = arith.constant 0 : i32
    %c0_i32_1 = arith.constant 0 : i32
    return %c0_i32, %c0_i32_0 : i32, i32
  }
  func.func @transform_11(%arg0: i32) -> (i32, i32) {
    %c0_i32 = arith.constant 0 : i32
    %c0_i32_0 = arith.constant 0 : i32
    return %arg0, %c0_i32 : i32, i32
  }
}

</mosaic_0001>

<bundles_post_ra>
// kernel: mlp_forward.1
= control target key start
LH: loop header
LB: loop body
LE: loop exit
PB: predicated region body
PF: predicated region fallthrough
CT: control target
= control target key end

     0   :  { %s5166_s0 = inlined_call_operand.vmem [shape: f32[64,32], index: 0, kind: input, shape index: {}]   ;;  %s5167_s1 = inlined_call_operand.vmem [shape: bf16[32,896], index: 1, kind: input, shape index: {}]   ;;  %s5168_s2 = inlined_call_operand.vmem [shape: f32[1,896], index: 2, kind: input, shape index: {}]   ;;  %s5169_s3 = inlined_call_operand.hbm [shape: bf16[896,512], index: 3, kind: input, shape index: {}]   ;;  %s5170_s4 = inlined_call_operand.vmem [shape: f32[1,512], index: 4, kind: input, shape index: {}]   ;;  %s5171_s5 = inlined_call_operand.hbm [shape: bf16[512,256], index: 5, kind: input, shape index: {}]   ;;  %s5172_s6 = inlined_call_operand.vmem [shape: f32[1,256], index: 6, kind: input, shape index: {}]   ;;  %s5173_s7 = inlined_call_operand.vmem [shape: bf16[256,64], index: 7, kind: input, shape index: {}]   ;;  %s5174_s8 = inlined_call_operand.vmem [shape: f32[1,64], index: 8, kind: input, shape index: {}]   ;;  %s5175_s9 = inlined_call_operand.vmem [shape: bf16[64,1], index: 9, kind: input, shape index: {}]   ;;  %s5176_s10 = inlined_call_operand.<no memory space> [shape: f32[1,1], index: 10, kind: input, shape index: {}]   ;;  %s5177_s11 = inlined_call_operand.vmem [shape: f32[64,1], index: 11, kind: output, shape index: {}]  }
   0x1   :  { %v16_v0 = vstv %s5176_s10 }
   0x2   :  { %17 = vst [vmem:[#allocation2] sm:$0x1] %v16_v0 }
   0x3   :  { %18 = vsyncpa [#allocation4], 0 }
   0x4   :  { %19 = vsyncpa [#allocation6], 0  ;;  %s4608_s19 = smov [#allocation3]   ;;  %s4560_s23 = scalar_lea.hbm %s5169_s3, 28672 }
   0x5   :  { %s31_s20 = sshll.u32 %s4608_s19, 4  ;;  %p4561_p0 = scmp.ne.s32.totalorder %s5169_s3, %s4560_s23  ;;  %s32_s20 = int_to_ptr.vmem [resolvable:$true] %s31_s20 }
   0x6   :  { %p4564_p1 = scmp.lt.u32.totalorder %s4560_s23, %s5169_s3 }
   0x8   :  { %p4566_p2 = pnand %p4564_p1, %p4561_p0 }
   0xa   :  { %4569 = shalt.err (!%p4566_p2)
}
   0xb   :  { %s4570_s10 = scalar_lea.vmem %s32_s20, 28672  ;;  %p4575_p4 = scmp.lt.s32.totalorder %s32_s20, %s32_s20 }
   0xc   :  { %p4571_p3 = scmp.ne.s32.totalorder %s32_s20, %s4570_s10  ;;  %p4576_p5 = scmp.lt.s32.totalorder %s4570_s10, %s4570_s10 }
   0xe   :  { %p4577_p6 = por %p4576_p5, %p4575_p4 }
  0x10   :  { %p4578_p7 = pnand %p4577_p6, %p4571_p3 }
  0x12   :  { %4581 = shalt.err (!%p4578_p7)
}
  0x13   :  { %s4609_s28 = smov 256   ;;  %s4610_s29 = smov 16  }
  0x14   :  { %37 = dma.hbm_to_vmem [thread:$0]  %s5169_s3, 28672, %s32_s20, [#allocation4], %s4609_s28, %s4609_s28, %s4610_s29  }
  0x15   :  { %s4611_s13 = smov [#allocation5]   ;;  %s4582_s17 = scalar_lea.hbm %s5171_s5, 8192 }
  0x16   :  { %s45_s14 = sshll.u32 %s4611_s13, 4  ;;  %p4583_p8 = scmp.ne.s32.totalorder %s5171_s5, %s4582_s17  ;;  %s46_s14 = int_to_ptr.vmem [resolvable:$true] %s45_s14 }
  0x17   :  { %p4586_p9 = scmp.lt.u32.totalorder %s4582_s17, %s5171_s5 }
  0x19   :  { %p4588_p10 = pnand %p4586_p9, %p4583_p8 }
  0x1b   :  { %4591 = shalt.err (!%p4588_p10)
}
  0x1c   :  { %s4592_s23 = scalar_lea.vmem %s46_s14, 8192  ;;  %p4597_p12 = scmp.lt.s32.totalorder %s46_s14, %s46_s14 }
  0x1d   :  { %p4593_p11 = scmp.ne.s32.totalorder %s46_s14, %s4592_s23  ;;  %p4598_p13 = scmp.lt.s32.totalorder %s4592_s23, %s4592_s23 }
  0x1f   :  { %p4599_p0 = por %p4598_p13, %p4597_p12 }
  0x21   :  { %p4600_p1 = pnand %p4599_p0, %p4593_p11 }
  0x23   :  { %4603 = shalt.err (!%p4600_p1)
}
  0x24   :  { %s4612_s3 = smov 128   ;;  %s4613_s20 = smov 8  }
  0x25   :  { %51 = dma.hbm_to_vmem [thread:$0]  %s5171_s5, 8192, %s46_s14, [#allocation6], %s4612_s3, %s4612_s3, %s4613_s20  }
  0x26   :  { %4604 = dma.done.wait [#allocation4], 28672  }
  0x27   :  { %4605 = vsyncadd [#allocation4], 4294938624 }
  0x28   :  { %4606 = dma.done.wait [#allocation6], 8192  }
  0x29   :  { %4607 = vsyncadd [#allocation6], 4294959104  ;;  %v4614_v1 = vmov 0   ;;  %v4088_v2 = vld [vmem:[%s5167_s1 + $0x4] ss:$28 sps:$4 sm:$0xff]   ;;  %v70_v7 = vld [vmem:[%s5166_s0 + $0x8] sm:$0xff] }
  0x2a   :  { %251 = vmatprep.mubr.bf16.mxu1 %v4614_v1  ;;  %397 = vmatprep.mubr.bf16.mxu0 %v4614_v1  ;;  %v4090_v3 = vld [vmem:[%s5167_s1] ss:$28 sps:$4 sm:$0xff]   ;;  %v4093_v5 = vld [vmem:[%s5167_s1 + $0x38] ss:$28 sps:$4 sm:$0xff]   ;;  %v4096_v8 = vld [vmem:[%s5167_s1 + $0xc] ss:$28 sps:$4 sm:$0xff]  }
  0x2b   :  { %219 = vmatprep.subr.bf16.mxu1 %v4088_v2  ;;  %v4091_v4 = vld [vmem:[%s5167_s1 + $0x3c] ss:$28 sps:$4 sm:$0xff]   ;;  %v69_v6 = vld [vmem:[%s5166_s0] sm:$0xff]  ;;  %vm206_vm0 = vcmask 261120   ;;  %v4100_v12 = vld [vmem:[%s5167_s1 + $0x14] ss:$28 sps:$4 sm:$0xff]  }
  0x2c   :  { %220 = vmatpush1.bf16.msra.mxu1 %v4090_v3  ;;  %v4725_v9 = vpack.c.bf16 %v70_v7, %v69_v6  ;;  %v4094_v10 = vld [vmem:[%s5167_s1 + $0x8] ss:$28 sps:$4 sm:$0xff]   ;;  %v71_v13 = vld [vmem:[%s5166_s0 + $0x10] sm:$0xff]  ;;  %v72_v14 = vld [vmem:[%s5166_s0 + $0x18] sm:$0xff]  ;;  %365 = vmatprep.subr.bf16.mxu0 %v4100_v12  ;;  %vm3402_vm1 = vcmask 523264   ;;  %vm3480_vm2 = vcmask 7168  }
  0x2d   :  { %221 = vmatprep.subr.bf16.mxu1 %v4091_v4  ;;  %v4099_v11 = vld [vmem:[%s5167_s1 + $0x44] ss:$28 sps:$4 sm:$0xff]   ;;  %v4102_v15 = vld [vmem:[%s5167_s1 + $0x10] ss:$28 sps:$4 sm:$0xff]   ;;  %v4106_v19 = vld [vmem:[%s5167_s1 + $0x18] ss:$28 sps:$4 sm:$0xff]   ;;  %v4760_v21 = vpack.c.bf16 %v72_v14, %v71_v13 }
  0x2e   :  { %v4097_v16 = vld [vmem:[%s5167_s1 + $0x40] ss:$28 sps:$4 sm:$0xff]   ;;  %v4103_v17 = vld [vmem:[%s5167_s1 + $0x4c] ss:$28 sps:$4 sm:$0xff]   ;;  %366 = vmatpush1.bf16.msra.mxu0 %v4102_v15  ;;  %v75_v31 = vld [vmem:[%s5166_s0 + $0x30] sm:$0xff] }
  0x2f   :  { %v4105_v18 = vld [vmem:[%s5167_s1 + $0x48] ss:$28 sps:$4 sm:$0xff]   ;;  %367 = vmatprep.subr.bf16.mxu0 %v4103_v17  ;;  %v76_v32 = vld [vmem:[%s5166_s0 + $0x38] sm:$0xff]  ;;  %v4107_v40 = vld [vmem:[%s5167_s1 + $0x50] ss:$28 sps:$4 sm:$0xff]  }
  0x30   :  { %222 = vmatpush1.bf16.msra.mxu1 %v4093_v5  ;;  %v4110_v20 = vld [vmem:[#allocation3 + $0x4] ss:$16 sps:$4 sm:$0xff]   ;;  %v4108_v22 = vld [vmem:[#allocation3] ss:$16 sps:$4 sm:$0xff]   ;;  %v4788_v35 = vpack.c.bf16 %v76_v32, %v75_v31  ;;  %v4113_v43 = vld [vmem:[#allocation3 + $0xc] ss:$16 sps:$4 sm:$0xff]   ;;  %v99_v31 = vlaneseq }
  0x31   :  { %292 = vmatprep.subr.bf16.mxu1 %v4096_v8  ;;  %v4116_v23 = vld [vmem:[#allocation3 + $0x24] ss:$16 sps:$4 sm:$0xff]   ;;  %v4114_v26 = vld [vmem:[#allocation3 + $0x20] ss:$16 sps:$4 sm:$0xff]   ;;  %v4111_v57 = vld [vmem:[#allocation3 + $0x8] ss:$16 sps:$4 sm:$0xff]  }
  0x32   :  { %368 = vmatpush1.bf16.msra.mxu0 %v4105_v18  ;;  %v73_v24 = vld [vmem:[%s5166_s0 + $0x20] sm:$0xff]  ;;  %v74_v25 = vld [vmem:[%s5166_s0 + $0x28] sm:$0xff]  ;;  %v4820_v32 = vshrl.u32 %v99_v31, 7 }
  0x33   :  { %3509 = vmatmul.mubr.msk.bf16.vlgmr.msra.gmra.mrb[0].mxu1 %vm206_vm0, %v4725_v9  ;;  %1953 = vmatprep.subr.bf16.mxu0 %v4110_v20  ;;  %v4122_v27 = vld [vmem:[#allocation3 + $0x44] ss:$16 sps:$4 sm:$0xff]   ;;  %v4774_v28 = vpack.c.bf16 %v74_v25, %v73_v24  ;;  %v4120_v29 = vld [vmem:[#allocation3 + $0x40] ss:$16 sps:$4 sm:$0xff]   ;;  %v4119_v58 = vld [vmem:[#allocation3 + $0x2c] ss:$16 sps:$4 sm:$0xff]  }
  0x34   :  { %293 = vmatpush1.bf16.msra.mxu1 %v4094_v10  ;;  %261 = vmatprep.mubr.bf16.mxu1 %v4614_v1  ;;  %v4128_v30 = vld [vmem:[#allocation3 + $0x64] ss:$16 sps:$4 sm:$0xff]   ;;  %v4126_v33 = vld [vmem:[#allocation3 + $0x60] ss:$16 sps:$4 sm:$0xff]   ;;  %v4117_v59 = vld [vmem:[#allocation3 + $0x28] ss:$16 sps:$4 sm:$0xff]  }
  0x35   :  { %294 = vmatprep.subr.bf16.mxu1 %v4099_v11  ;;  %3517 = vmatmul.mubr.msk.bf16.vlgmr.msra.gmra.mrb[0].mxu0 %vm206_vm0, %v4725_v9  ;;  %v4134_v34 = vld [vmem:[#allocation3 + $0x84] ss:$16 sps:$4 sm:$0xff]   ;;  %v4132_v36 = vld [vmem:[#allocation3 + $0x80] ss:$16 sps:$4 sm:$0xff]   ;;  %v4125_v60 = vld [vmem:[#allocation3 + $0x4c] ss:$16 sps:$4 sm:$0xff]  }
  0x36   :  { %407 = vmatprep.mubr.bf16.mxu0 %v4614_v1  ;;  %1954 = vmatpush1.bf16.msra.mxu0 %v4108_v22  ;;  %v4140_v37 = vld [vmem:[#allocation3 + $0xa4] ss:$16 sps:$4 sm:$0xff]   ;;  %v4138_v38 = vld [vmem:[#allocation3 + $0xa0] ss:$16 sps:$4 sm:$0xff]   ;;  %v4123_v61 = vld [vmem:[#allocation3 + $0x48] ss:$16 sps:$4 sm:$0xff]  }
  0x37   :  { %1955 = vmatprep.subr.bf16.mxu0 %v4116_v23  ;;  %v4146_v39 = vld [vmem:[#allocation3 + $0xc4] ss:$16 sps:$4 sm:$0xff]   ;;  %v4144_v41 = vld [vmem:[#allocation3 + $0xc0] ss:$16 sps:$4 sm:$0xff]   ;;  %v4131_v62 = vld [vmem:[#allocation3 + $0x6c] ss:$16 sps:$4 sm:$0xff]  }
  0x38   :  { %295 = vmatpush1.bf16.msra.mxu1 %v4097_v16  ;;  %v4152_v42 = vld [vmem:[#allocation3 + $0xe4] ss:$16 sps:$4 sm:$0xff]   ;;  %v4150_v44 = vld [vmem:[#allocation3 + $0xe0] ss:$16 sps:$4 sm:$0xff]   ;;  %v4129_v63 = vld [vmem:[#allocation3 + $0x68] ss:$16 sps:$4 sm:$0xff]  }
  0x39   :  { %3893 = vmatprep.subr.bf16.mxu1 %v4106_v19  ;;  %v4158_v45 = vld [vmem:[#allocation3 + $0x104] ss:$16 sps:$4 sm:$0xff]   ;;  %v4156_v46 = vld [vmem:[#allocation3 + $0x100] ss:$16 sps:$4 sm:$0xff]   ;;  %v4137_v0 = vld [vmem:[#allocation3 + $0x8c] ss:$16 sps:$4 sm:$0xff]  }
  0x3a   :  { %1956 = vmatpush1.bf16.msra.mxu0 %v4114_v26  ;;  %v4164_v47 = vld [vmem:[#allocation3 + $0x124] ss:$16 sps:$4 sm:$0xff]   ;;  %v4162_v48 = vld [vmem:[#allocation3 + $0x120] ss:$16 sps:$4 sm:$0xff]   ;;  %v4135_v2 = vld [vmem:[#allocation3 + $0x88] ss:$16 sps:$4 sm:$0xff]  }
  0x3b   :  { %3510 = vmatmul.mubr.msk.bf16.gmra.mrb[4].mxu1 %vm206_vm0, %v4760_v21  ;;  %1957 = vmatprep.subr.bf16.mxu0 %v4122_v27  ;;  %v4170_v49 = vld [vmem:[#allocation3 + $0x144] ss:$16 sps:$4 sm:$0xff]   ;;  %v4168_v50 = vld [vmem:[#allocation3 + $0x140] ss:$16 sps:$4 sm:$0xff]   ;;  %v4143_v3 = vld [vmem:[#allocation3 + $0xac] ss:$16 sps:$4 sm:$0xff]  }
  0x3c   :  { %271 = vmatprep.mubr.bf16.mxu1 %v4614_v1  ;;  %v4176_v51 = vld [vmem:[#allocation3 + $0x164] ss:$16 sps:$4 sm:$0xff]   ;;  %v4174_v52 = vld [vmem:[#allocation3 + $0x160] ss:$16 sps:$4 sm:$0xff]   ;;  %v4141_v4 = vld [vmem:[#allocation3 + $0xa8] ss:$16 sps:$4 sm:$0xff]  }
  0x3d   :  { %3518 = vmatmul.mubr.msk.bf16.gmra.mrb[4].mxu0 %vm206_vm0, %v4760_v21  ;;  %v4182_v53 = vld [vmem:[#allocation3 + $0x184] ss:$16 sps:$4 sm:$0xff]   ;;  %v4180_v54 = vld [vmem:[#allocation3 + $0x180] ss:$16 sps:$4 sm:$0xff]   ;;  %v4149_v5 = vld [vmem:[#allocation3 + $0xcc] ss:$16 sps:$4 sm:$0xff]  }
  0x3e   :  { %417 = vmatprep.mubr.bf16.mxu0 %v4614_v1  ;;  %1958 = vmatpush1.bf16.msra.mxu0 %v4120_v29  ;;  %v4188_v55 = vld [vmem:[#allocation3 + $0x1a4] ss:$16 sps:$4 sm:$0xff]   ;;  %v4186_v56 = vld [vmem:[#allocation3 + $0x1a0] ss:$16 sps:$4 sm:$0xff]   ;;  %v4147_v6 = vld [vmem:[#allocation3 + $0xc8] ss:$16 sps:$4 sm:$0xff]  }
  0x3f   :  { %1959 = vmatprep.subr.bf16.mxu0 %v4128_v30  ;;  %v4194_v7 = vld [vmem:[#allocation3 + $0x1c4] ss:$16 sps:$4 sm:$0xff]   ;;  %v4155_v8 = vld [vmem:[#allocation3 + $0xec] ss:$16 sps:$4 sm:$0xff]   ;;  %v4153_v10 = vld [vmem:[#allocation3 + $0xe8] ss:$16 sps:$4 sm:$0xff]  }
  0x40   :  { %v4200_v11 = vld [vmem:[#allocation3 + $0x1e4] ss:$16 sps:$4 sm:$0xff]   ;;  %v4161_v12 = vld [vmem:[#allocation3 + $0x10c] ss:$16 sps:$4 sm:$0xff]   ;;  %v4198_v13 = vld [vmem:[#allocation3 + $0x1e0] ss:$16 sps:$4 sm:$0xff]  }
  0x41   :  { %v4206_v14 = vld [vmem:[#allocation3 + $0x204] ss:$16 sps:$4 sm:$0xff]   ;;  %v4159_v15 = vld [vmem:[#allocation3 + $0x108] ss:$16 sps:$4 sm:$0xff]   ;;  %v4167_v16 = vld [vmem:[#allocation3 + $0x12c] ss:$16 sps:$4 sm:$0xff]  }
  0x42   :  { %1960 = vmatpush1.bf16.msra.mxu0 %v4126_v33  ;;  %v4165_v17 = vld [vmem:[#allocation3 + $0x128] ss:$16 sps:$4 sm:$0xff]   ;;  %v4173_v18 = vld [vmem:[#allocation3 + $0x14c] ss:$16 sps:$4 sm:$0xff]   ;;  %v4823_v33 = vsub.s32 0, %v4820_v32 }
  0x43   :  { %3511 = vmatmul.mubr.msk.bf16.gmra.mrb[8].mxu1 %vm206_vm0, %v4774_v28  ;;  %1961 = vmatprep.subr.bf16.mxu0 %v4134_v34  ;;  %v4179_v20 = vld [vmem:[#allocation3 + $0x16c] ss:$16 sps:$4 sm:$0xff]   ;;  %v4183_v23 = vld [vmem:[#allocation3 + $0x188] ss:$16 sps:$4 sm:$0xff]   ;;  %v4224_v31 = vld [vmem:[#allocation3 + $0x264] ss:$16 sps:$4 sm:$0xff]  }
  0x44   :  { %281 = vmatprep.mubr.bf16.mxu1 %v4614_v1  ;;  %v4185_v22 = vld [vmem:[#allocation3 + $0x18c] ss:$16 sps:$4 sm:$0xff]   ;;  %v4189_v25 = vld [vmem:[#allocation3 + $0x1a8] ss:$16 sps:$4 sm:$0xff]  }
  0x45   :  { %3519 = vmatmul.mubr.msk.bf16.gmra.mrb[8].mxu0 %vm206_vm0, %v4774_v28  ;;  %v4191_v24 = vld [vmem:[#allocation3 + $0x1ac] ss:$16 sps:$4 sm:$0xff]   ;;  %v4195_v27 = vld [vmem:[#allocation3 + $0x1c8] ss:$16 sps:$4 sm:$0xff]  }
  0x46   :  { %427 = vmatprep.mubr.bf16.mxu0 %v4614_v1  ;;  %1962 = vmatpush1.bf16.msra.mxu0 %v4132_v36  ;;  %v4197_v26 = vld [vmem:[#allocation3 + $0x1cc] ss:$16 sps:$4 sm:$0xff]   ;;  %v4201_v29 = vld [vmem:[#allocation3 + $0x1e8] ss:$16 sps:$4 sm:$0xff]  }
  0x47   :  { %1963 = vmatprep.subr.bf16.mxu0 %v4140_v37  ;;  %v4209_v30 = vld [vmem:[#allocation3 + $0x20c] ss:$16 sps:$4 sm:$0xff]  }
  0x48   :  { %v4828_v34 = vld [vmem:[%s5168_s2] sm:$0xff] }
  0x49   :  { %v4835_v36 = vrot.slane %v4828_v34, %v4823_v33 }
  0x4a   :  { %1964 = vmatpush1.bf16.msra.mxu0 %v4138_v38 }
  0x4b   :  { %3512 = vmatmul.mubr.msk.bf16.gmra.mrb[12].mxu1 %vm206_vm0, %v4788_v35  ;;  %1965 = vmatprep.subr.bf16.mxu0 %v4146_v39 }
  0x4c   :  { %324 = vmatprep.mubr.bf16.mxu1 %v4614_v1 }
  0x4d   :  { %3520 = vmatmul.mubr.msk.bf16.gmra.mrb[12].mxu0 %vm206_vm0, %v4788_v35 }
  0x4e   :  { %1966 = vmatpush1.bf16.msra.mxu0 %v4144_v41 }
  0x4f   :  { %1967 = vmatprep.subr.bf16.mxu0 %v4152_v42 }
  0x52   :  { %1968 = vmatpush1.bf16.msra.mxu0 %v4150_v44 }
  0x53   :  { %3513 = vmatmul.mubr.msk.bf16.vlgmr.msra.gmra.mrb[16].mxu1 %vm206_vm0, %v4725_v9  ;;  %1969 = vmatprep.subr.bf16.mxu0 %v4158_v45 }
  0x54   :  { %334 = vmatprep.mubr.bf16.mxu1 %v4614_v1  ;;  %3894 = vmatpush3.bf16.msra.mxu1 %v4106_v19  ;;  %v4171_v19 = vld [vmem:[#allocation3 + $0x148] ss:$16 sps:$4 sm:$0xff]  }
  0x55   :  { %3895 = vmatprep.subr.bf16.mxu1 %v4107_v40 }
  0x56   :  { %1970 = vmatpush1.bf16.msra.mxu0 %v4156_v46  ;;  %v121_v46 = vsub.s32 5, %v4820_v32 }
  0x57   :  { %1971 = vmatprep.subr.bf16.mxu0 %v4164_v47 }
  0x58   :  { %3896 = vmatpush3.bf16.msra.mxu1 %v4107_v40 }
  0x59   :  { %2245 = vmatprep.subr.bf16.mxu1 %v4113_v43  ;;  %v117_v43 = vsub.s32 4, %v4820_v32 }
  0x5a   :  { %1972 = vmatpush1.bf16.msra.mxu0 %v4162_v48 }
  0x5b   :  { %3514 = vmatmul.mubr.msk.bf16.gmra.mrb[20].mxu1 %vm206_vm0, %v4760_v21  ;;  %1973 = vmatprep.subr.bf16.mxu0 %v4170_v49 }
  0x5c   :  { %344 = vmatprep.mubr.bf16.mxu1 %v4614_v1 }
  0x5e   :  { %1974 = vmatpush1.bf16.msra.mxu0 %v4168_v50 }
  0x5f   :  { %1975 = vmatprep.subr.bf16.mxu0 %v4176_v51 }
  0x62   :  { %1976 = vmatpush1.bf16.msra.mxu0 %v4174_v52  ;;  %v4848_v52 = vrot.slane %v4828_v34, %v117_v43 }
  0x63   :  { %3515 = vmatmul.mubr.msk.bf16.gmra.mrb[24].mxu1 %vm206_vm0, %v4774_v28  ;;  %1977 = vmatprep.subr.bf16.mxu0 %v4182_v53 }
  0x64   :  { %354 = vmatprep.mubr.bf16.mxu1 %v4614_v1 }
  0x66   :  { %1978 = vmatpush1.bf16.msra.mxu0 %v4180_v54  ;;  %v4851_v54 = vrot.slane %v4828_v34, %v121_v46 }
  0x67   :  { %1979 = vmatprep.subr.bf16.mxu0 %v4188_v55 }
  0x6a   :  { %1980 = vmatpush1.bf16.msra.mxu0 %v4186_v56  ;;  %v4204_v56 = vld [vmem:[#allocation3 + $0x200] ss:$16 sps:$4 sm:$0xff]  }
  0x6b   :  { %3516 = vmatmul.mubr.msk.bf16.gmra.mrb[28].mxu1 %vm206_vm0, %v4788_v35  ;;  %1981 = vmatprep.subr.bf16.mxu0 %v4194_v7 }
  0x6c   :  { %3897 = vmatprep.mubr.msk.bf16.mxu1 %vm206_vm0, %v4725_v9  ;;  %v4192_v9 = vld [vmem:[#allocation3 + $0x1c0] ss:$16 sps:$4 sm:$0xff]  }
  0x6e   :  { %1982 = vmatpush1.bf16.msra.mxu0 %v4192_v9 }
  0x6f   :  { %1983 = vmatprep.subr.bf16.mxu0 %v4200_v11  ;;  %v4213_v11 = vld [vmem:[#allocation3 + $0x228] ss:$16 sps:$4 sm:$0xff]  }
  0x72   :  { %1984 = vmatpush1.bf16.msra.mxu0 %v4198_v13 }
  0x73   :  { %3898 = vmatmul.mubr.msk.bf16.vlgmr.msra.gmra.mrb[32].mxu1 %vm206_vm0, %v4760_v21  ;;  %2026 = vmatprep.subr.bf16.mxu0 %v4206_v14  ;;  %v4177_v21 = vld [vmem:[#allocation3 + $0x168] ss:$16 sps:$4 sm:$0xff]  }
  0x74   :  { %2246 = vmatpush1.bf16.msra.mxu1 %v4111_v57  ;;  %3901 = vmatprep.mubr.msk.bf16.mxu1 %vm206_vm0, %v4774_v28  ;;  %v4203_v28 = vld [vmem:[#allocation3 + $0x1ec] ss:$16 sps:$4 sm:$0xff]   ;;  %v4207_v57 = vld [vmem:[#allocation3 + $0x208] ss:$16 sps:$4 sm:$0xff]  }
  0x75   :  { %2247 = vmatprep.subr.bf16.mxu1 %v4119_v58 }
  0x78   :  { %2248 = vmatpush1.bf16.msra.mxu1 %v4117_v59  ;;  %v4212_v59 = vld [vmem:[#allocation3 + $0x224] ss:$16 sps:$4 sm:$0xff]  }
  0x79   :  { %2249 = vmatprep.subr.bf16.mxu1 %v4125_v60  ;;  %v4215_v60 = vld [vmem:[#allocation3 + $0x22c] ss:$16 sps:$4 sm:$0xff]  }
  0x7b   :  { %3902 = vmatmul.mubr.msk.bf16.gmra.mrb[36].mxu1 %vm206_vm0, %v4788_v35  ;;  %v4831_v35 = vsub.s32 1, %v4820_v32 }
  0x7c   :  { %2250 = vmatpush1.bf16.msra.mxu1 %v4123_v61 }
  0x7d   :  { %2251 = vmatprep.subr.bf16.mxu1 %v4131_v62  ;;  %v4839_v37 = vrot.slane %v4828_v34, %v4831_v35 }
  0x80   :  { %2252 = vmatpush1.bf16.msra.mxu1 %v4129_v63 }
  0x81   :  { %2253 = vmatprep.subr.bf16.mxu1 %v4137_v0 }
  0x84   :  { %2254 = vmatpush1.bf16.msra.mxu1 %v4135_v2 }
  0x85   :  { %2255 = vmatprep.subr.bf16.mxu1 %v4143_v3 }
  0x88   :  { %2256 = vmatpush1.bf16.msra.mxu1 %v4141_v4 }
  0x89   :  { %2257 = vmatprep.subr.bf16.mxu1 %v4149_v5  ;;  %v4210_v5 = vld [vmem:[#allocation3 + $0x220] ss:$16 sps:$4 sm:$0xff]  }
  0x8c   :  { %2258 = vmatpush1.bf16.msra.mxu1 %v4147_v6 }
  0x8d   :  { %2259 = vmatprep.subr.bf16.mxu1 %v4155_v8 }
  0x90   :  { %2260 = vmatpush1.bf16.msra.mxu1 %v4153_v10 }
  0x91   :  { %2261 = vmatprep.subr.bf16.mxu1 %v4161_v12 }
  0x94   :  { %2262 = vmatpush1.bf16.msra.mxu1 %v4159_v15 }
  0x95   :  { %2263 = vmatprep.subr.bf16.mxu1 %v4167_v16 }
  0x98   :  { %2264 = vmatpush1.bf16.msra.mxu1 %v4165_v17  ;;  %v4218_v17 = vld [vmem:[#allocation3 + $0x244] ss:$16 sps:$4 sm:$0xff]  }
  0x99   :  { %2265 = vmatprep.subr.bf16.mxu1 %v4173_v18  ;;  %v4221_v18 = vld [vmem:[#allocation3 + $0x24c] ss:$16 sps:$4 sm:$0xff]  }
  0x9c   :  { %2266 = vmatpush1.bf16.msra.mxu1 %v4171_v19 }
  0x9d   :  { %2267 = vmatprep.subr.bf16.mxu1 %v4179_v20 }
  0xa0   :  { %2268 = vmatpush1.bf16.msra.mxu1 %v4177_v21 }
  0xa1   :  { %2269 = vmatprep.subr.bf16.mxu1 %v4185_v22 }
  0xa4   :  { %2270 = vmatpush1.bf16.msra.mxu1 %v4183_v23 }
  0xa5   :  { %2271 = vmatprep.subr.bf16.mxu1 %v4191_v24 }
  0xa8   :  { %2272 = vmatpush1.bf16.msra.mxu1 %v4189_v25 }
  0xa9   :  { %2273 = vmatprep.subr.bf16.mxu1 %v4197_v26  ;;  %v4216_v26 = vld [vmem:[#allocation3 + $0x240] ss:$16 sps:$4 sm:$0xff]  }
  0xac   :  { %2274 = vmatpush1.bf16.msra.mxu1 %v4195_v27  ;;  %v4219_v27 = vld [vmem:[#allocation3 + $0x248] ss:$16 sps:$4 sm:$0xff]  }
  0xad   :  { %2275 = vmatprep.subr.bf16.mxu1 %v4203_v28 }
  0xb0   :  { %2276 = vmatpush1.bf16.msra.mxu1 %v4201_v29 }
  0xb1   :  { %2318 = vmatprep.subr.bf16.mxu1 %v4209_v30 }
 0x106   :  { %v253_v38 = vpop.f32.mrb[0].mxu1 }
 0x107   :  { %v254_v39 = vadd.f32 %v253_v38, %v4835_v36  ;;  %v255_v40 = vpop.f32.mrb[1].mxu1  ;;  %v4227_v38 = vld [vmem:[#allocation3 + $0x26c] ss:$16 sps:$4 sm:$0xff]  }
 0x108   :  { %v256_v41 = vadd.f32 %v255_v40, %v4839_v37  ;;  %v257_v42 = vpop.f32.mrb[2].mxu1  ;;  %v399_v63 = vpop.f32.mrb[0].mxu0 }
 0x109   :  { %v258_v44 = vadd.f32 %v257_v42, %v4835_v36  ;;  %v259_v45 = vpop.f32.mrb[3].mxu1  ;;  %v503_v48 = vmax.f32 %v254_v39, 0.0  ;;  %v400_v3 = vadd.f32 %v399_v63, %v4848_v52  ;;  %v401_v4 = vpop.f32.mrb[1].mxu0 }
 0x10a   :  { %v260_v47 = vadd.f32 %v259_v45, %v4839_v37  ;;  %v504_v50 = vmax.f32 %v256_v41, 0.0  ;;  %v402_v9 = vadd.f32 %v401_v4, %v4851_v54  ;;  %v403_v10 = vpop.f32.mrb[2].mxu0 }
 0x10b   :  { %v510_v49 = vmax.f32 %v258_v44, 0.0  ;;  %v507_v14 = vmax.f32 %v400_v3, 0.0  ;;  %v404_v15 = vadd.f32 %v403_v10, %v4848_v52  ;;  %v405_v16 = vpop.f32.mrb[3].mxu0 }
 0x10c   :  { %v511_v51 = vmax.f32 %v260_v47, 0.0  ;;  %v508_v20 = vmax.f32 %v402_v9, 0.0  ;;  %v406_v21 = vadd.f32 %v405_v16, %v4851_v54  ;;  %v4222_v47 = vld [vmem:[#allocation3 + $0x260] ss:$16 sps:$4 sm:$0xff]   ;;  %v4236_v9 = vld [vmem:[#allocation3 + $0x2a4] ss:$16 sps:$4 sm:$0xff]  }
 0x10d   :  { %v559_v53 = vpack.c.bf16 %v510_v49, %v503_v48  ;;  %v514_v23 = vmax.f32 %v404_v15, 0.0  ;;  %v109_v16 = vsub.s32 2, %v4820_v32 }
 0x10e   :  { %v560_v55 = vpack.c.bf16 %v511_v51, %v504_v50  ;;  %v263_v58 = vpop.f32.mrb[4].mxu1  ;;  %v515_v25 = vmax.f32 %v406_v21, 0.0  ;;  %v113_v21 = vsub.s32 3, %v4820_v32 }
 0x10f   :  { %v264_v61 = vadd.f32 %v263_v58, %v4835_v36  ;;  %v265_v62 = vpop.f32.mrb[5].mxu1  ;;  %v4861_v30 = vpack.c.bf16 %v514_v23, %v507_v14 }
 0x110   :  { %1985 = vmatprep.mubr.bf16.mxu0 %v560_v55  ;;  %2277 = vmatprep.mubr.bf16.mxu1 %v560_v55  ;;  %v266_v0 = vadd.f32 %v265_v62, %v4839_v37  ;;  %v267_v2 = vpop.f32.mrb[6].mxu1  ;;  %v4864_v41 = vpack.c.bf16 %v515_v25, %v508_v20  ;;  %v409_v42 = vpop.f32.mrb[4].mxu0  ;;  %v4225_v55 = vld [vmem:[#allocation3 + $0x268] ss:$16 sps:$4 sm:$0xff]   ;;  %v4233_v62 = vld [vmem:[#allocation3 + $0x28c] ss:$16 sps:$4 sm:$0xff]  }
 0x111   :  { %1986 = vmatmul.mubr.bf16.vlgmr.msra.gmra.mrb[16].mxu0 %v559_v53  ;;  %2278 = vmatmul.mubr.bf16.vlgmr.msra.gmra.mrb[40].mxu1 %v559_v53  ;;  %v517_v6 = vmax.f32 %v264_v61, 0.0  ;;  %v268_v7 = vadd.f32 %v267_v2, %v4835_v36  ;;  %v269_v8 = vpop.f32.mrb[7].mxu1  ;;  %v410_v45 = vadd.f32 %v409_v42, %v4848_v52  ;;  %v411_v46 = vpop.f32.mrb[5].mxu0  ;;  %v4230_v61 = vld [vmem:[#allocation3 + $0x284] ss:$16 sps:$4 sm:$0xff]  }
 0x112   :  { %2027 = vmatpush1.bf16.msra.mxu0 %v4204_v56  ;;  %2319 = vmatpush1.bf16.msra.mxu1 %v4207_v57  ;;  %v518_v12 = vmax.f32 %v266_v0, 0.0  ;;  %v270_v13 = vadd.f32 %v269_v8, %v4839_v37  ;;  %v412_v51 = vadd.f32 %v411_v46, %v4851_v54  ;;  %v413_v53 = vpop.f32.mrb[6].mxu0  ;;  %v4231_v8 = vld [vmem:[#allocation3 + $0x288] ss:$16 sps:$4 sm:$0xff]   ;;  %v4889_v46 = vrot.slane %v4828_v34, %v109_v16 }
 0x113   :  { %2028 = vmatprep.subr.bf16.mxu0 %v4212_v59  ;;  %2320 = vmatprep.subr.bf16.mxu1 %v4215_v60  ;;  %v524_v19 = vmax.f32 %v268_v7, 0.0  ;;  %v521_v58 = vmax.f32 %v410_v45, 0.0  ;;  %v414_v59 = vadd.f32 %v413_v53, %v4848_v52  ;;  %v415_v60 = vpop.f32.mrb[7].mxu0 }
 0x114   :  { %v525_v22 = vmax.f32 %v270_v13, 0.0  ;;  %v522_v0 = vmax.f32 %v412_v51, 0.0  ;;  %v416_v2 = vadd.f32 %v415_v60, %v4851_v54  ;;  %v4239_v13 = vld [vmem:[#allocation3 + $0x2ac] ss:$16 sps:$4 sm:$0xff]   ;;  %v4248_v60 = vld [vmem:[#allocation3 + $0x2e4] ss:$16 sps:$4 sm:$0xff]  }
 0x115   :  { %v566_v24 = vpack.c.bf16 %v524_v19, %v517_v6  ;;  %v528_v4 = vmax.f32 %v414_v59, 0.0 }
 0x116   :  { %2029 = vmatpush1.bf16.msra.mxu0 %v4210_v5  ;;  %2321 = vmatpush1.bf16.msra.mxu1 %v4213_v11  ;;  %v567_v28 = vpack.c.bf16 %v525_v22, %v518_v12  ;;  %v273_v29 = vpop.f32.mrb[8].mxu1  ;;  %v4228_v5 = vld [vmem:[#allocation3 + $0x280] ss:$16 sps:$4 sm:$0xff]   ;;  %v529_v7 = vmax.f32 %v416_v2, 0.0 }
 0x117   :  { %2030 = vmatprep.subr.bf16.mxu0 %v4218_v17  ;;  %2322 = vmatprep.subr.bf16.mxu1 %v4221_v18  ;;  %v274_v39 = vadd.f32 %v273_v29, %v4835_v36  ;;  %v275_v40 = vpop.f32.mrb[9].mxu1  ;;  %v4873_v12 = vpack.c.bf16 %v528_v4, %v521_v58 }
 0x118   :  { %v276_v43 = vadd.f32 %v275_v40, %v4839_v37  ;;  %v277_v44 = vpop.f32.mrb[10].mxu1  ;;  %1995 = vmatprep.mubr.bf16.mxu0 %v567_v28  ;;  %2287 = vmatprep.mubr.bf16.mxu1 %v567_v28  ;;  %v4877_v17 = vpack.c.bf16 %v529_v7, %v522_v0  ;;  %v419_v18 = vpop.f32.mrb[8].mxu0 }
 0x119   :  { %v531_v48 = vmax.f32 %v274_v39, 0.0  ;;  %v278_v49 = vadd.f32 %v277_v44, %v4835_v36  ;;  %v279_v50 = vpop.f32.mrb[11].mxu1  ;;  %1996 = vmatmul.mubr.bf16.gmra.mrb[20].mxu0 %v566_v24  ;;  %2288 = vmatmul.mubr.bf16.gmra.mrb[44].mxu1 %v566_v24  ;;  %v420_v22 = vadd.f32 %v419_v18, %v4848_v52  ;;  %v421_v23 = vpop.f32.mrb[9].mxu0  ;;  %v4234_v24 = vld [vmem:[#allocation3 + $0x2a0] ss:$16 sps:$4 sm:$0xff]  }
 0x11a   :  { %2031 = vmatpush1.bf16.msra.mxu0 %v4216_v26  ;;  %2323 = vmatpush1.bf16.msra.mxu1 %v4219_v27  ;;  %v532_v56 = vmax.f32 %v276_v43, 0.0  ;;  %v280_v57 = vadd.f32 %v279_v50, %v4839_v37  ;;  %v422_v28 = vadd.f32 %v421_v23, %v4851_v54  ;;  %v423_v29 = vpop.f32.mrb[10].mxu0  ;;  %v4242_v44 = vld [vmem:[#allocation3 + $0x2c4] ss:$16 sps:$4 sm:$0xff]  }
 0x11b   :  { %2032 = vmatprep.subr.bf16.mxu0 %v4224_v31  ;;  %2324 = vmatprep.subr.bf16.mxu1 %v4227_v38  ;;  %v538_v63 = vmax.f32 %v278_v49, 0.0  ;;  %v4237_v31 = vld [vmem:[#allocation3 + $0x2a8] ss:$16 sps:$4 sm:$0xff]   ;;  %v535_v40 = vmax.f32 %v420_v22, 0.0  ;;  %v424_v42 = vadd.f32 %v423_v29, %v4848_v52  ;;  %v425_v43 = vpop.f32.mrb[11].mxu0 }
 0x11c   :  { %v539_v3 = vmax.f32 %v280_v57, 0.0 }
 0x11d   :  { %v573_v6 = vpack.c.bf16 %v538_v63, %v531_v48  ;;  %v426_v48 = vadd.f32 %v425_v43, %v4851_v54  ;;  %v542_v50 = vmax.f32 %v424_v42, 0.0 }
 0x11e   :  { %2033 = vmatpush1.bf16.msra.mxu0 %v4222_v47  ;;  %2325 = vmatpush1.bf16.msra.mxu1 %v4225_v55  ;;  %v574_v10 = vpack.c.bf16 %v539_v3, %v532_v56  ;;  %v283_v11 = vpop.f32.mrb[12].mxu1  ;;  %v536_v47 = vmax.f32 %v422_v28, 0.0  ;;  %v4240_v55 = vld [vmem:[#allocation3 + $0x2c0] ss:$16 sps:$4 sm:$0xff]   ;;  %v4243_v56 = vld [vmem:[#allocation3 + $0x2c8] ss:$16 sps:$4 sm:$0xff]  }
 0x11f   :  { %2034 = vmatprep.subr.bf16.mxu0 %v4230_v61  ;;  %2326 = vmatprep.subr.bf16.mxu1 %v4233_v62  ;;  %v284_v14 = vadd.f32 %v283_v11, %v4835_v36  ;;  %v285_v15 = vpop.f32.mrb[13].mxu1  ;;  %v543_v53 = vmax.f32 %v426_v48, 0.0  ;;  %v4897_v59 = vpack.c.bf16 %v542_v50, %v535_v40  ;;  %v4251_v61 = vld [vmem:[#allocation3 + $0x2ec] ss:$16 sps:$4 sm:$0xff]   ;;  %v4249_v11 = vld [vmem:[#allocation3 + $0x2e8] ss:$16 sps:$4 sm:$0xff]  }
 0x120   :  { %v286_v19 = vadd.f32 %v285_v15, %v4839_v37  ;;  %v287_v20 = vpop.f32.mrb[14].mxu1  ;;  %2005 = vmatprep.mubr.bf16.mxu0 %v574_v10  ;;  %2297 = vmatprep.mubr.bf16.mxu1 %v574_v10  ;;  %v429_v4 = vpop.f32.mrb[12].mxu0 }
 0x121   :  { %v545_v25 = vmax.f32 %v284_v14, 0.0  ;;  %v288_v26 = vadd.f32 %v287_v20, %v4835_v36  ;;  %v289_v27 = vpop.f32.mrb[15].mxu1  ;;  %2006 = vmatmul.mubr.bf16.gmra.mrb[24].mxu0 %v573_v6  ;;  %2298 = vmatmul.mubr.bf16.gmra.mrb[48].mxu1 %v573_v6  ;;  %v4245_v36 = vld [vmem:[#allocation3 + $0x2cc] ss:$16 sps:$4 sm:$0xff]   ;;  %v4900_v0 = vpack.c.bf16 %v543_v53, %v536_v47  ;;  %v431_v10 = vpop.f32.mrb[13].mxu0 }
 0x122   :  { %2035 = vmatpush1.bf16.msra.mxu0 %v4228_v5  ;;  %2327 = vmatpush1.bf16.msra.mxu1 %v4231_v8  ;;  %v546_v38 = vmax.f32 %v286_v19, 0.0  ;;  %v290_v39 = vadd.f32 %v289_v27, %v4839_v37  ;;  %v4895_v37 = vrot.slane %v4828_v34, %v113_v21  ;;  %v4246_v5 = vld [vmem:[#allocation3 + $0x2e0] ss:$16 sps:$4 sm:$0xff]   ;;  %v432_v18 = vadd.f32 %v431_v10, %v4851_v54  ;;  %v433_v19 = vpop.f32.mrb[14].mxu0  ;;  %v4257_v20 = vld [vmem:[#allocation3 + $0x30c] ss:$16 sps:$4 sm:$0xff]  }
 0x123   :  { %2036 = vmatprep.subr.bf16.mxu0 %v4236_v9  ;;  %2328 = vmatprep.subr.bf16.mxu1 %v4239_v13  ;;  %v552_v45 = vmax.f32 %v288_v26, 0.0  ;;  %v430_v9 = vadd.f32 %v429_v4, %v4848_v52  ;;  %v4254_v13 = vld [vmem:[#allocation3 + $0x304] ss:$16 sps:$4 sm:$0xff]   ;;  %v4267_v4 = vld [vmem:[#allocation3 + $0x348] ss:$16 sps:$4 sm:$0xff]  }
 0x124   :  { %v553_v49 = vmax.f32 %v290_v39, 0.0  ;;  %v550_v27 = vmax.f32 %v432_v18, 0.0  ;;  %v4255_v39 = vld [vmem:[#allocation3 + $0x308] ss:$16 sps:$4 sm:$0xff]  }
 0x125   :  { %v580_v51 = vpack.c.bf16 %v552_v45, %v545_v25  ;;  %v549_v23 = vmax.f32 %v430_v9, 0.0  ;;  %v435_v25 = vpop.f32.mrb[15].mxu0 }
 0x126   :  { %2037 = vmatpush1.bf16.msra.mxu0 %v4234_v24  ;;  %2329 = vmatpush1.bf16.msra.mxu1 %v4237_v31  ;;  %v581_v57 = vpack.c.bf16 %v553_v49, %v546_v38  ;;  %v326_v58 = vpop.f32.mrb[16].mxu1  ;;  %v434_v24 = vadd.f32 %v433_v19, %v4848_v52  ;;  %v436_v28 = vadd.f32 %v435_v25, %v4851_v54  ;;  %v4252_v38 = vld [vmem:[#allocation3 + $0x300] ss:$16 sps:$4 sm:$0xff]   ;;  %v4281_v25 = vld [vmem:[#allocation3 + $0x38c] ss:$16 sps:$4 sm:$0xff]  }
 0x127   :  { %2038 = vmatprep.subr.bf16.mxu0 %v4242_v44  ;;  %2330 = vmatprep.subr.bf16.mxu1 %v4245_v36  ;;  %v327_v62 = vadd.f32 %v326_v58, %v4889_v46  ;;  %v328_v63 = vpop.f32.mrb[17].mxu1  ;;  %v4260_v44 = vld [vmem:[#allocation3 + $0x324] ss:$16 sps:$4 sm:$0xff]   ;;  %v4263_v36 = vld [vmem:[#allocation3 + $0x32c] ss:$16 sps:$4 sm:$0xff]  }
 0x128   :  { %v329_v2 = vadd.f32 %v328_v63, %v4895_v37  ;;  %2015 = vmatprep.mubr.bf16.mxu0 %v581_v57  ;;  %2307 = vmatprep.mubr.bf16.mxu1 %v581_v57  ;;  %v330_v3 = vpop.f32.mrb[18].mxu1  ;;  %v556_v31 = vmax.f32 %v434_v24, 0.0  ;;  %v557_v43 = vmax.f32 %v436_v28, 0.0  ;;  %v4270_v19 = vld [vmem:[#allocation3 + $0x360] ss:$16 sps:$4 sm:$0xff]  }
 0x129   :  { %v505_v6 = vmax.f32 %v327_v62, 0.0  ;;  %v331_v7 = vadd.f32 %v330_v3, %v4889_v46  ;;  %2016 = vmatmul.mubr.bf16.gmra.mrb[28].mxu0 %v580_v51  ;;  %2308 = vmatmul.mubr.bf16.gmra.mrb[52].mxu1 %v580_v51  ;;  %v332_v8 = vpop.f32.mrb[19].mxu1  ;;  %v4264_v3 = vld [vmem:[#allocation3 + $0x340] ss:$16 sps:$4 sm:$0xff]   ;;  %v4278_v24 = vld [vmem:[#allocation3 + $0x384] ss:$16 sps:$4 sm:$0xff]  }
 0x12a   :  { %2039 = vmatpush1.bf16.msra.mxu0 %v4240_v55  ;;  %2331 = vmatpush1.bf16.msra.mxu1 %v4243_v56  ;;  %v506_v14 = vmax.f32 %v329_v2, 0.0  ;;  %v333_v15 = vadd.f32 %v332_v8, %v4895_v37  ;;  %v4912_v47 = vpack.c.bf16 %v556_v31, %v549_v23  ;;  %v4915_v49 = vpack.c.bf16 %v557_v43, %v550_v27  ;;  %v4258_v55 = vld [vmem:[#allocation3 + $0x320] ss:$16 sps:$4 sm:$0xff]   ;;  %v4261_v56 = vld [vmem:[#allocation3 + $0x328] ss:$16 sps:$4 sm:$0xff]  }
 0x12b   :  { %2040 = vmatprep.subr.bf16.mxu0 %v4248_v60  ;;  %2332 = vmatprep.subr.bf16.mxu1 %v4251_v61  ;;  %v512_v22 = vmax.f32 %v331_v7, 0.0  ;;  %v4266_v60 = vld [vmem:[#allocation3 + $0x344] ss:$16 sps:$4 sm:$0xff]   ;;  %v4269_v61 = vld [vmem:[#allocation3 + $0x34c] ss:$16 sps:$4 sm:$0xff]  }
 0x12c   :  { %v513_v26 = vmax.f32 %v333_v15, 0.0  ;;  %v4272_v7 = vld [vmem:[#allocation3 + $0x364] ss:$16 sps:$4 sm:$0xff]   ;;  %v4275_v8 = vld [vmem:[#allocation3 + $0x36c] ss:$16 sps:$4 sm:$0xff]  }
 0x12d   :  { %v4909_v29 = vpack.c.bf16 %v512_v22, %v505_v6  ;;  %v4276_v31 = vld [vmem:[#allocation3 + $0x380] ss:$16 sps:$4 sm:$0xff]   ;;  %v4287_v43 = vld [vmem:[#allocation3 + $0x3ac] ss:$16 sps:$4 sm:$0xff]  }
 0x12e   :  { %2041 = vmatpush1.bf16.msra.mxu0 %v4246_v5  ;;  %2333 = vmatpush1.bf16.msra.mxu1 %v4249_v11  ;;  %v562_v40 = vpack.c.bf16 %v513_v26, %v506_v14  ;;  %v336_v42 = vpop.f32.mrb[20].mxu1 }
 0x12f   :  { %2042 = vmatprep.subr.bf16.mxu0 %v4254_v13  ;;  %2334 = vmatprep.subr.bf16.mxu1 %v4257_v20  ;;  %v337_v52 = vadd.f32 %v336_v42, %v4889_v46  ;;  %v338_v45 = vpop.f32.mrb[21].mxu1  ;;  %v4273_v20 = vld [vmem:[#allocation3 + $0x368] ss:$16 sps:$4 sm:$0xff]   ;;  %v4284_v42 = vld [vmem:[#allocation3 + $0x3a4] ss:$16 sps:$4 sm:$0xff]  }
 0x130   :  { %2058 = vmatprep.mubr.bf16.mxu0 %v562_v40  ;;  %2350 = vmatprep.mubr.bf16.mxu1 %v562_v40  ;;  %v339_v54 = vadd.f32 %v338_v45, %v4895_v37  ;;  %v340_v48 = vpop.f32.mrb[22].mxu1 }
 0x131   :  { %v519_v50 = vmax.f32 %v337_v52, 0.0  ;;  %v341_v51 = vadd.f32 %v340_v48, %v4889_v46  ;;  %v342_v53 = vpop.f32.mrb[23].mxu1  ;;  %v125_v52 = vsub.s32 6, %v4820_v32 }
 0x132   :  { %2043 = vmatpush1.bf16.msra.mxu0 %v4252_v38  ;;  %2335 = vmatpush1.bf16.msra.mxu1 %v4255_v39  ;;  %v520_v57 = vmax.f32 %v339_v54, 0.0  ;;  %v343_v58 = vadd.f32 %v342_v53, %v4895_v37  ;;  %v4279_v38 = vld [vmem:[#allocation3 + $0x388] ss:$16 sps:$4 sm:$0xff]   ;;  %v4282_v53 = vld [vmem:[#allocation3 + $0x3a0] ss:$16 sps:$4 sm:$0xff]  }
 0x133   :  { %2044 = vmatprep.subr.bf16.mxu0 %v4260_v44  ;;  %2336 = vmatprep.subr.bf16.mxu1 %v4263_v36  ;;  %v526_v62 = vmax.f32 %v341_v51, 0.0 }
 0x134   :  { %v527_v63 = vmax.f32 %v343_v58, 0.0  ;;  %v4290_v58 = vld [vmem:[#allocation3 + $0x3c4] ss:$16 sps:$4 sm:$0xff]  }
 0x135   :  { %v4919_v2 = vpack.c.bf16 %v526_v62, %v519_v50  ;;  %v126_v62 = vrot.slane %v4828_v34, %v125_v52 }
 0x136   :  { %2045 = vmatpush1.bf16.msra.mxu0 %v4258_v55  ;;  %2337 = vmatpush1.bf16.msra.mxu1 %v4261_v56  ;;  %v4921_v5 = vpack.c.bf16 %v527_v63, %v520_v57  ;;  %v346_v6 = vpop.f32.mrb[24].mxu1  ;;  %v4285_v55 = vld [vmem:[#allocation3 + $0x3a8] ss:$16 sps:$4 sm:$0xff]  }
 0x137   :  { %2046 = vmatprep.subr.bf16.mxu0 %v4266_v60  ;;  %2338 = vmatprep.subr.bf16.mxu1 %v4269_v61  ;;  %v347_v9 = vadd.f32 %v346_v6, %v4889_v46  ;;  %v348_v10 = vpop.f32.mrb[25].mxu1  ;;  %v4293_v60 = vld [vmem:[#allocation3 + $0x3cc] ss:$16 sps:$4 sm:$0xff]  }
 0x138   :  { %v349_v11 = vadd.f32 %v348_v10, %v4895_v37  ;;  %v350_v13 = vpop.f32.mrb[26].mxu1 }
 0x139   :  { %v533_v14 = vmax.f32 %v347_v9, 0.0  ;;  %v351_v15 = vadd.f32 %v350_v13, %v4889_v46  ;;  %v352_v18 = vpop.f32.mrb[27].mxu1 }
 0x13a   :  { %2047 = vmatpush1.bf16.msra.mxu0 %v4264_v3  ;;  %2339 = vmatpush1.bf16.msra.mxu1 %v4267_v4  ;;  %v534_v22 = vmax.f32 %v349_v11, 0.0  ;;  %v353_v23 = vadd.f32 %v352_v18, %v4895_v37  ;;  %v4291_v4 = vld [vmem:[#allocation3 + $0x3c8] ss:$16 sps:$4 sm:$0xff]   ;;  %v4294_v18 = vld [vmem:[#allocation3 + $0x3e0] ss:$16 sps:$4 sm:$0xff]  }
 0x13b   :  { %2048 = vmatprep.subr.bf16.mxu0 %v4272_v7  ;;  %2340 = vmatprep.subr.bf16.mxu1 %v4275_v8  ;;  %v540_v26 = vmax.f32 %v351_v15, 0.0  ;;  %v4299_v8 = vld [vmem:[#allocation3 + $0x3ec] ss:$16 sps:$4 sm:$0xff]  }
 0x13c   :  { %v541_v27 = vmax.f32 %v353_v23, 0.0  ;;  %v4302_v23 = vld [vmem:[#allocation3 + $0x404] ss:$16 sps:$4 sm:$0xff]  }
 0x13d   :  { %v4927_v28 = vpack.c.bf16 %v540_v26, %v533_v14 }
 0x13e   :  { %2049 = vmatpush1.bf16.msra.mxu0 %v4270_v19  ;;  %2341 = vmatpush1.bf16.msra.mxu1 %v4273_v20  ;;  %v4929_v39 = vpack.c.bf16 %v541_v27, %v534_v22  ;;  %v356_v40 = vpop.f32.mrb[28].mxu1  ;;  %v4297_v19 = vld [vmem:[#allocation3 + $0x3e8] ss:$16 sps:$4 sm:$0xff]  }
 0x13f   :  { %2050 = vmatprep.subr.bf16.mxu0 %v4278_v24  ;;  %2342 = vmatprep.subr.bf16.mxu1 %v4281_v25  ;;  %v357_v44 = vadd.f32 %v356_v40, %v4889_v46  ;;  %v358_v36 = vpop.f32.mrb[29].mxu1  ;;  %v4305_v24 = vld [vmem:[#allocation3 + $0x40c] ss:$16 sps:$4 sm:$0xff]  }
 0x140   :  { %v359_v45 = vadd.f32 %v358_v36, %v4895_v37  ;;  %v360_v54 = vpop.f32.mrb[30].mxu1 }
 0x141   :  { %v547_v48 = vmax.f32 %v357_v44, 0.0  ;;  %v361_v50 = vadd.f32 %v360_v54, %v4889_v46  ;;  %v362_v51 = vpop.f32.mrb[31].mxu1  ;;  %v4288_v46 = vld [vmem:[#allocation3 + $0x3c0] ss:$16 sps:$4 sm:$0xff]   ;;  %v4311_v44 = vld [vmem:[#allocation3 + $0x42c] ss:$16 sps:$4 sm:$0xff]  }
 0x142   :  { %2051 = vmatpush1.bf16.msra.mxu0 %v4276_v31  ;;  %2343 = vmatpush1.bf16.msra.mxu1 %v4279_v38  ;;  %v548_v56 = vmax.f32 %v359_v45, 0.0  ;;  %v363_v57 = vadd.f32 %v362_v51, %v4895_v37  ;;  %v4296_v37 = vld [vmem:[#allocation3 + $0x3e4] ss:$16 sps:$4 sm:$0xff]   ;;  %v4300_v31 = vld [vmem:[#allocation3 + $0x400] ss:$16 sps:$4 sm:$0xff]  }
 0x143   :  { %2052 = vmatprep.subr.bf16.mxu0 %v4284_v42  ;;  %2344 = vmatprep.subr.bf16.mxu1 %v4287_v43  ;;  %v554_v61 = vmax.f32 %v361_v50, 0.0  ;;  %v4303_v38 = vld [vmem:[#allocation3 + $0x408] ss:$16 sps:$4 sm:$0xff]   ;;  %v4308_v43 = vld [vmem:[#allocation3 + $0x424] ss:$16 sps:$4 sm:$0xff]  }
 0x144   :  { %v555_v63 = vmax.f32 %v363_v57, 0.0 }
 0x145   :  { %v4937_v3 = vpack.c.bf16 %v554_v61, %v547_v48 }
 0x146   :  { %2053 = vmatpush1.bf16.msra.mxu0 %v4282_v53  ;;  %2345 = vmatpush1.bf16.msra.mxu1 %v4285_v55  ;;  %v4939_v6 = vpack.c.bf16 %v555_v63, %v548_v56  ;;  %v3899_v7 = vpop.f32.mrb[32].mxu1  ;;  %v4306_v53 = vld [vmem:[#allocation3 + $0x420] ss:$16 sps:$4 sm:$0xff]   ;;  %v4309_v55 = vld [vmem:[#allocation3 + $0x428] ss:$16 sps:$4 sm:$0xff]  }
 0x147   :  { %2054 = vmatprep.subr.bf16.mxu0 %v4290_v58  ;;  %2346 = vmatprep.subr.bf16.mxu1 %v4293_v60  ;;  %v481_v9 = vadd.f32 %v3899_v7, %v126_v62  ;;  %v472_v10 = vpop.f32.mrb[33].mxu1  ;;  %v4314_v58 = vld [vmem:[#allocation3 + $0x444] ss:$16 sps:$4 sm:$0xff]   ;;  %v4317_v60 = vld [vmem:[#allocation3 + $0x44c] ss:$16 sps:$4 sm:$0xff]  }
 0x148   :  { %v473_v11 = vadd.f32 %v472_v10, %v126_v62  ;;  %v3900_v13 = vpop.f32.mrb[34].mxu1  ;;  %v4329_v10 = vld [vmem:[#allocation3 + $0x48c] ss:$16 sps:$4 sm:$0xff]  }
 0x149   :  { %v523_v14 = vmax.f32 %v481_v9, 0.0  ;;  %v484_v34 = vadd.f32 %v3900_v13, %v126_v62  ;;  %v475_v15 = vpop.f32.mrb[35].mxu1  ;;  %v4326_v9 = vld [vmem:[#allocation3 + $0x484] ss:$16 sps:$4 sm:$0xff]   ;;  %v4327_v13 = vld [vmem:[#allocation3 + $0x488] ss:$16 sps:$4 sm:$0xff]  }
 0x14a   :  { %2055 = vmatpush1.bf16.msra.mxu0 %v4288_v46  ;;  %2347 = vmatpush1.bf16.msra.mxu1 %v4291_v4  ;;  %v509_v20 = vmax.f32 %v473_v11, 0.0  ;;  %v476_v22 = vadd.f32 %v475_v15, %v126_v62  ;;  %v4312_v46 = vld [vmem:[#allocation3 + $0x440] ss:$16 sps:$4 sm:$0xff]   ;;  %v4315_v4 = vld [vmem:[#allocation3 + $0x448] ss:$16 sps:$4 sm:$0xff]  }
 0x14b   :  { %2056 = vmatprep.subr.bf16.mxu0 %v4296_v37  ;;  %2348 = vmatprep.subr.bf16.mxu1 %v4299_v8  ;;  %v530_v25 = vmax.f32 %v484_v34, 0.0  ;;  %v4323_v37 = vld [vmem:[#allocation3 + $0x46c] ss:$16 sps:$4 sm:$0xff]   ;;  %v4321_v8 = vld [vmem:[#allocation3 + $0x468] ss:$16 sps:$4 sm:$0xff]  }
 0x14c   :  { %v516_v26 = vmax.f32 %v476_v22, 0.0  ;;  %v4324_v11 = vld [vmem:[#allocation3 + $0x480] ss:$16 sps:$4 sm:$0xff]   ;;  %v4333_v15 = vld [vmem:[#allocation3 + $0x4a8] ss:$16 sps:$4 sm:$0xff]  }
 0x14d   :  { %v4941_v27 = vpack.c.bf16 %v530_v25, %v523_v14  ;;  %v4332_v14 = vld [vmem:[#allocation3 + $0x4a4] ss:$16 sps:$4 sm:$0xff]   ;;  %v4330_v34 = vld [vmem:[#allocation3 + $0x4a0] ss:$16 sps:$4 sm:$0xff]  }
 0x14e   :  { %2057 = vmatpush1.bf16.msra.mxu0 %v4294_v18  ;;  %2349 = vmatpush1.bf16.msra.mxu1 %v4297_v19  ;;  %v4943_v40 = vpack.c.bf16 %v516_v26, %v509_v20  ;;  %v3903_v42 = vpop.f32.mrb[36].mxu1  ;;  %v4338_v18 = vld [vmem:[#allocation3 + $0x4c4] ss:$16 sps:$4 sm:$0xff]   ;;  %v4336_v19 = vld [vmem:[#allocation3 + $0x4c0] ss:$16 sps:$4 sm:$0xff]  }
 0x14f   :  { %2099 = vmatprep.subr.bf16.mxu0 %v4302_v23  ;;  %2391 = vmatprep.subr.bf16.mxu1 %v4305_v24  ;;  %v497_v36 = vadd.f32 %v3903_v42, %v126_v62  ;;  %v488_v52 = vpop.f32.mrb[37].mxu1  ;;  %v4339_v20 = vld [vmem:[#allocation3 + $0x4c8] ss:$16 sps:$4 sm:$0xff]   ;;  %v4344_v22 = vld [vmem:[#allocation3 + $0x4e4] ss:$16 sps:$4 sm:$0xff]  }
 0x150   :  { %v489_v45 = vadd.f32 %v488_v52, %v126_v62  ;;  %v3904_v54 = vpop.f32.mrb[38].mxu1  ;;  %v4342_v23 = vld [vmem:[#allocation3 + $0x4e0] ss:$16 sps:$4 sm:$0xff]   ;;  %v4345_v24 = vld [vmem:[#allocation3 + $0x4e8] ss:$16 sps:$4 sm:$0xff]  }
 0x151   :  { %2059 = vmatmul.mubr.bf16.vlgmr.msra.gmra.mrb[16].mxu0 %v4909_v29  ;;  %2351 = vmatmul.mubr.bf16.vlgmr.msra.gmra.mrb[40].mxu1 %v4909_v29  ;;  %v551_v48 = vmax.f32 %v497_v36, 0.0  ;;  %v500_v50 = vadd.f32 %v3904_v54, %v126_v62  ;;  %v491_v51 = vpop.f32.mrb[39].mxu1  ;;  %v4350_v25 = vld [vmem:[#allocation3 + $0x504] ss:$16 sps:$4 sm:$0xff]   ;;  %v4348_v26 = vld [vmem:[#allocation3 + $0x500] ss:$16 sps:$4 sm:$0xff]  }
 0x152   :  { %2100 = vmatpush1.bf16.msra.mxu0 %v4300_v31  ;;  %2392 = vmatpush1.bf16.msra.mxu1 %v4303_v38  ;;  %v537_v56 = vmax.f32 %v489_v45, 0.0  ;;  %v492_v57 = vadd.f32 %v491_v51, %v126_v62  ;;  %v4320_v62 = vld [vmem:[#allocation3 + $0x464] ss:$16 sps:$4 sm:$0xff]   ;;  %v4351_v31 = vld [vmem:[#allocation3 + $0x508] ss:$16 sps:$4 sm:$0xff]  }
 0x153   :  { %2101 = vmatprep.subr.bf16.mxu0 %v4308_v43  ;;  %2393 = vmatprep.subr.bf16.mxu1 %v4311_v44  ;;  %v558_v61 = vmax.f32 %v500_v50, 0.0  ;;  %v4356_v38 = vld [vmem:[#allocation3 + $0x524] ss:$16 sps:$4 sm:$0xff]   ;;  %v4354_v42 = vld [vmem:[#allocation3 + $0x520] ss:$16 sps:$4 sm:$0xff]  }
 0x154   :  { %2068 = vmatprep.mubr.bf16.mxu0 %v4921_v5  ;;  %2360 = vmatprep.mubr.bf16.mxu1 %v4921_v5  ;;  %v544_v63 = vmax.f32 %v492_v57, 0.0  ;;  %v4318_v5 = vld [vmem:[#allocation3 + $0x460] ss:$16 sps:$4 sm:$0xff]   ;;  %v4357_v43 = vld [vmem:[#allocation3 + $0x528] ss:$16 sps:$4 sm:$0xff]  }
 0x155   :  { %v4949_v29 = vpack.c.bf16 %v558_v61, %v551_v48  ;;  %v4362_v44 = vld [vmem:[#allocation3 + $0x544] ss:$16 sps:$4 sm:$0xff]   ;;  %v4365_v36 = vld [vmem:[#allocation3 + $0x54c] ss:$16 sps:$4 sm:$0xff]   ;;  %v4360_v52 = vld [vmem:[#allocation3 + $0x540] ss:$16 sps:$4 sm:$0xff]  }
 0x156   :  { %2102 = vmatpush1.bf16.msra.mxu0 %v4306_v53  ;;  %2394 = vmatpush1.bf16.msra.mxu1 %v4309_v55  ;;  %v4951_v7 = vpack.c.bf16 %v544_v63, %v537_v56  ;;  %v4368_v45 = vld [vmem:[#allocation3 + $0x564] ss:$16 sps:$4 sm:$0xff]   ;;  %v4371_v54 = vld [vmem:[#allocation3 + $0x56c] ss:$16 sps:$4 sm:$0xff]   ;;  %v4366_v48 = vld [vmem:[#allocation3 + $0x560] ss:$16 sps:$4 sm:$0xff]  }
 0x157   :  { %2103 = vmatprep.subr.bf16.mxu0 %v4314_v58  ;;  %2395 = vmatprep.subr.bf16.mxu1 %v4317_v60  ;;  %v4369_v50 = vld [vmem:[#allocation3 + $0x568] ss:$16 sps:$4 sm:$0xff]   ;;  %v4374_v51 = vld [vmem:[#allocation3 + $0x584] ss:$16 sps:$4 sm:$0xff]   ;;  %v4377_v53 = vld [vmem:[#allocation3 + $0x58c] ss:$16 sps:$4 sm:$0xff]  }
 0x158   :  { %v4372_v55 = vld [vmem:[#allocation3 + $0x580] ss:$16 sps:$4 sm:$0xff]   ;;  %v4375_v56 = vld [vmem:[#allocation3 + $0x588] ss:$16 sps:$4 sm:$0xff]   ;;  %v4380_v57 = vld [vmem:[#allocation3 + $0x5a4] ss:$16 sps:$4 sm:$0xff]  }
 0x159   :  { %2069 = vmatmul.mubr.bf16.gmra.mrb[20].mxu0 %v4919_v2  ;;  %2361 = vmatmul.mubr.bf16.gmra.mrb[44].mxu1 %v4919_v2  ;;  %v4335_v2 = vld [vmem:[#allocation3 + $0x4ac] ss:$16 sps:$4 sm:$0xff]   ;;  %v4378_v60 = vld [vmem:[#allocation3 + $0x5a0] ss:$16 sps:$4 sm:$0xff]   ;;  %v4381_v61 = vld [vmem:[#allocation3 + $0x5a8] ss:$16 sps:$4 sm:$0xff]  }
 0x15a   :  { %2104 = vmatpush1.bf16.msra.mxu0 %v4312_v46  ;;  %2396 = vmatpush1.bf16.msra.mxu1 %v4315_v4  ;;  %v4383_v58 = vld [vmem:[#allocation3 + $0x5ac] ss:$16 sps:$4 sm:$0xff]   ;;  %v4386_v63 = vld [vmem:[#allocation3 + $0x5c4] ss:$16 sps:$4 sm:$0xff]   ;;  %v4384_v4 = vld [vmem:[#allocation3 + $0x5c0] ss:$16 sps:$4 sm:$0xff]  }
 0x15b   :  { %2105 = vmatprep.subr.bf16.mxu0 %v4320_v62  ;;  %2397 = vmatprep.subr.bf16.mxu1 %v4323_v37  ;;  %v4389_v46 = vld [vmem:[#allocation3 + $0x5cc] ss:$16 sps:$4 sm:$0xff]   ;;  %v4387_v62 = vld [vmem:[#allocation3 + $0x5c8] ss:$16 sps:$4 sm:$0xff]   ;;  %v4392_v37 = vld [vmem:[#allocation3 + $0x5e4] ss:$16 sps:$4 sm:$0xff]  }
 0x15c   :  { %2078 = vmatprep.mubr.bf16.mxu0 %v4929_v39  ;;  %2370 = vmatprep.mubr.bf16.mxu1 %v4929_v39  ;;  %v4341_v39 = vld [vmem:[#allocation3 + $0x4cc] ss:$16 sps:$4 sm:$0xff]  }
 0x15e   :  { %2106 = vmatpush1.bf16.msra.mxu0 %v4318_v5  ;;  %2398 = vmatpush1.bf16.msra.mxu1 %v4321_v8  ;;  %v4395_v5 = vld [vmem:[#allocation3 + $0x5ec] ss:$16 sps:$4 sm:$0xff]   ;;  %v4390_v8 = vld [vmem:[#allocation3 + $0x5e0] ss:$16 sps:$4 sm:$0xff]  }
 0x15f   :  { %2107 = vmatprep.subr.bf16.mxu0 %v4326_v9  ;;  %2399 = vmatprep.subr.bf16.mxu1 %v4329_v10  ;;  %v4393_v9 = vld [vmem:[#allocation3 + $0x5e8] ss:$16 sps:$4 sm:$0xff]   ;;  %v4398_v10 = vld [vmem:[#allocation3 + $0x604] ss:$16 sps:$4 sm:$0xff]  }
 0x161   :  { %2079 = vmatmul.mubr.bf16.gmra.mrb[24].mxu0 %v4927_v28  ;;  %2371 = vmatmul.mubr.bf16.gmra.mrb[48].mxu1 %v4927_v28  ;;  %v4347_v28 = vld [vmem:[#allocation3 + $0x4ec] ss:$16 sps:$4 sm:$0xff]  }
 0x162   :  { %2108 = vmatpush1.bf16.msra.mxu0 %v4324_v11  ;;  %2400 = vmatpush1.bf16.msra.mxu1 %v4327_v13  ;;  %v4401_v11 = vld [vmem:[#allocation3 + $0x60c] ss:$16 sps:$4 sm:$0xff]   ;;  %v4396_v13 = vld [vmem:[#allocation3 + $0x600] ss:$16 sps:$4 sm:$0xff]  }
 0x163   :  { %2109 = vmatprep.subr.bf16.mxu0 %v4332_v14  ;;  %2401 = vmatprep.subr.bf16.mxu1 %v4335_v2  ;;  %v4399_v14 = vld [vmem:[#allocation3 + $0x608] ss:$16 sps:$4 sm:$0xff]   ;;  %v4404_v2 = vld [vmem:[#allocation3 + $0x624] ss:$16 sps:$4 sm:$0xff]  }
 0x164   :  { %2088 = vmatprep.mubr.bf16.mxu0 %v4939_v6  ;;  %2380 = vmatprep.mubr.bf16.mxu1 %v4939_v6  ;;  %v4353_v6 = vld [vmem:[#allocation3 + $0x50c] ss:$16 sps:$4 sm:$0xff]  }
 0x166   :  { %2110 = vmatpush1.bf16.msra.mxu0 %v4330_v34  ;;  %2402 = vmatpush1.bf16.msra.mxu1 %v4333_v15  ;;  %v4407_v34 = vld [vmem:[#allocation3 + $0x62c] ss:$16 sps:$4 sm:$0xff]   ;;  %v4402_v15 = vld [vmem:[#allocation3 + $0x620] ss:$16 sps:$4 sm:$0xff]  }
 0x167   :  { %2111 = vmatprep.subr.bf16.mxu0 %v4338_v18  ;;  %2403 = vmatprep.subr.bf16.mxu1 %v4341_v39  ;;  %v4405_v18 = vld [vmem:[#allocation3 + $0x628] ss:$16 sps:$4 sm:$0xff]   ;;  %v4410_v39 = vld [vmem:[#allocation3 + $0x644] ss:$16 sps:$4 sm:$0xff]  }
 0x169   :  { %2089 = vmatmul.mubr.bf16.gmra.mrb[28].mxu0 %v4937_v3  ;;  %2381 = vmatmul.mubr.bf16.gmra.mrb[52].mxu1 %v4937_v3  ;;  %v4359_v3 = vld [vmem:[#allocation3 + $0x52c] ss:$16 sps:$4 sm:$0xff]  }
 0x16a   :  { %2112 = vmatpush1.bf16.msra.mxu0 %v4336_v19  ;;  %2404 = vmatpush1.bf16.msra.mxu1 %v4339_v20  ;;  %v4413_v19 = vld [vmem:[#allocation3 + $0x64c] ss:$16 sps:$4 sm:$0xff]   ;;  %v4408_v20 = vld [vmem:[#allocation3 + $0x640] ss:$16 sps:$4 sm:$0xff]  }
 0x16b   :  { %2113 = vmatprep.subr.bf16.mxu0 %v4344_v22  ;;  %2405 = vmatprep.subr.bf16.mxu1 %v4347_v28  ;;  %v4411_v22 = vld [vmem:[#allocation3 + $0x648] ss:$16 sps:$4 sm:$0xff]   ;;  %v4416_v28 = vld [vmem:[#allocation3 + $0x664] ss:$16 sps:$4 sm:$0xff]  }
 0x16c   :  { %2131 = vmatprep.mubr.bf16.mxu0 %v4864_v41  ;;  %2423 = vmatprep.mubr.bf16.mxu1 %v4864_v41  ;;  %v4363_v41 = vld [vmem:[#allocation3 + $0x548] ss:$16 sps:$4 sm:$0xff]  }
 0x16e   :  { %2114 = vmatpush1.bf16.msra.mxu0 %v4342_v23  ;;  %2406 = vmatpush1.bf16.msra.mxu1 %v4345_v24  ;;  %v4414_v23 = vld [vmem:[#allocation3 + $0x660] ss:$16 sps:$4 sm:$0xff]   ;;  %v4417_v24 = vld [vmem:[#allocation3 + $0x668] ss:$16 sps:$4 sm:$0xff]  }
 0x16f   :  { %2115 = vmatprep.subr.bf16.mxu0 %v4350_v25  ;;  %2407 = vmatprep.subr.bf16.mxu1 %v4353_v6  ;;  %v4422_v25 = vld [vmem:[#allocation3 + $0x684] ss:$16 sps:$4 sm:$0xff]   ;;  %v4420_v6 = vld [vmem:[#allocation3 + $0x680] ss:$16 sps:$4 sm:$0xff]  }
 0x172   :  { %2116 = vmatpush1.bf16.msra.mxu0 %v4348_v26  ;;  %2408 = vmatpush1.bf16.msra.mxu1 %v4351_v31  ;;  %v4423_v26 = vld [vmem:[#allocation3 + $0x688] ss:$16 sps:$4 sm:$0xff]   ;;  %v4428_v31 = vld [vmem:[#allocation3 + $0x6a4] ss:$16 sps:$4 sm:$0xff]  }
 0x173   :  { %2117 = vmatprep.subr.bf16.mxu0 %v4356_v38  ;;  %2409 = vmatprep.subr.bf16.mxu1 %v4359_v3  ;;  %v4426_v38 = vld [vmem:[#allocation3 + $0x6a0] ss:$16 sps:$4 sm:$0xff]   ;;  %v4429_v3 = vld [vmem:[#allocation3 + $0x6a8] ss:$16 sps:$4 sm:$0xff]  }
 0x176   :  { %2118 = vmatpush1.bf16.msra.mxu0 %v4354_v42  ;;  %2410 = vmatpush1.bf16.msra.mxu1 %v4357_v43  ;;  %v4434_v42 = vld [vmem:[#allocation3 + $0x6c4] ss:$16 sps:$4 sm:$0xff]   ;;  %v4432_v43 = vld [vmem:[#allocation3 + $0x6c0] ss:$16 sps:$4 sm:$0xff]  }
 0x177   :  { %2119 = vmatprep.subr.bf16.mxu0 %v4362_v44  ;;  %2411 = vmatprep.subr.bf16.mxu1 %v4365_v36  ;;  %v4435_v44 = vld [vmem:[#allocation3 + $0x6c8] ss:$16 sps:$4 sm:$0xff]   ;;  %v4440_v36 = vld [vmem:[#allocation3 + $0x6e4] ss:$16 sps:$4 sm:$0xff]  }
 0x17a   :  { %2120 = vmatpush1.bf16.msra.mxu0 %v4360_v52  ;;  %2412 = vmatpush1.bf16.msra.mxu1 %v4363_v41  ;;  %v4438_v52 = vld [vmem:[#allocation3 + $0x6e0] ss:$16 sps:$4 sm:$0xff]   ;;  %v4441_v41 = vld [vmem:[#allocation3 + $0x6e8] ss:$16 sps:$4 sm:$0xff]  }
 0x17b   :  { %2121 = vmatprep.subr.bf16.mxu0 %v4368_v45  ;;  %2413 = vmatprep.subr.bf16.mxu1 %v4371_v54  ;;  %v4446_v45 = vld [vmem:[#allocation5 + $0x4] ss:$8 sps:$4 sm:$0xff]   ;;  %v4449_v54 = vld [vmem:[#allocation5 + $0x14] ss:$8 sps:$4 sm:$0xff]  }
 0x17e   :  { %2122 = vmatpush1.bf16.msra.mxu0 %v4366_v48  ;;  %2414 = vmatpush1.bf16.msra.mxu1 %v4369_v50  ;;  %v4452_v48 = vld [vmem:[#allocation5 + $0x24] ss:$8 sps:$4 sm:$0xff]   ;;  %v4450_v50 = vld [vmem:[#allocation5 + $0x20] ss:$8 sps:$4 sm:$0xff]  }
 0x17f   :  { %2123 = vmatprep.subr.bf16.mxu0 %v4374_v51  ;;  %2415 = vmatprep.subr.bf16.mxu1 %v4377_v53  ;;  %v4455_v51 = vld [vmem:[#allocation5 + $0x34] ss:$8 sps:$4 sm:$0xff]   ;;  %v4458_v53 = vld [vmem:[#allocation5 + $0x44] ss:$8 sps:$4 sm:$0xff]  }
 0x182   :  { %2124 = vmatpush1.bf16.msra.mxu0 %v4372_v55  ;;  %2416 = vmatpush1.bf16.msra.mxu1 %v4375_v56  ;;  %v4456_v55 = vld [vmem:[#allocation5 + $0x40] ss:$8 sps:$4 sm:$0xff]   ;;  %v4461_v56 = vld [vmem:[#allocation5 + $0x54] ss:$8 sps:$4 sm:$0xff]  }
 0x183   :  { %2125 = vmatprep.subr.bf16.mxu0 %v4380_v57  ;;  %2417 = vmatprep.subr.bf16.mxu1 %v4383_v58  ;;  %v4464_v57 = vld [vmem:[#allocation5 + $0x64] ss:$8 sps:$4 sm:$0xff]   ;;  %v4462_v58 = vld [vmem:[#allocation5 + $0x60] ss:$8 sps:$4 sm:$0xff]  }
 0x186   :  { %2126 = vmatpush1.bf16.msra.mxu0 %v4378_v60  ;;  %2418 = vmatpush1.bf16.msra.mxu1 %v4381_v61  ;;  %v4467_v60 = vld [vmem:[#allocation5 + $0x74] ss:$8 sps:$4 sm:$0xff]   ;;  %v4465_v61 = vld [vmem:[#allocation5 + $0x70] ss:$8 sps:$4 sm:$0xff]  }
 0x187   :  { %2127 = vmatprep.subr.bf16.mxu0 %v4386_v63  ;;  %2419 = vmatprep.subr.bf16.mxu1 %v4389_v46  ;;  %v4468_v63 = vld [vmem:[#allocation5 + $0x80] ss:$8 sps:$4 sm:$0xff]   ;;  %v4471_v46 = vld [vmem:[#allocation5 + $0x90] ss:$8 sps:$4 sm:$0xff]  }
 0x18a   :  { %2128 = vmatpush1.bf16.msra.mxu0 %v4384_v4  ;;  %2420 = vmatpush1.bf16.msra.mxu1 %v4387_v62  ;;  %v4476_v4 = vld [vmem:[#allocation5 + $0xa4] ss:$8 sps:$4 sm:$0xff]   ;;  %v4474_v62 = vld [vmem:[#allocation5 + $0xa0] ss:$8 sps:$4 sm:$0xff]  }
 0x18b   :  { %2129 = vmatprep.subr.bf16.mxu0 %v4392_v37  ;;  %2421 = vmatprep.subr.bf16.mxu1 %v4395_v5  ;;  %v4479_v37 = vld [vmem:[#allocation5 + $0xb4] ss:$8 sps:$4 sm:$0xff]   ;;  %v4477_v5 = vld [vmem:[#allocation5 + $0xb0] ss:$8 sps:$4 sm:$0xff]  }
 0x18e   :  { %2130 = vmatpush1.bf16.msra.mxu0 %v4390_v8  ;;  %2422 = vmatpush1.bf16.msra.mxu1 %v4393_v9  ;;  %v4480_v8 = vld [vmem:[#allocation5 + $0xc0] ss:$8 sps:$4 sm:$0xff]   ;;  %v4485_v9 = vld [vmem:[#allocation5 + $0xd4] ss:$8 sps:$4 sm:$0xff]  }
 0x18f   :  { %2172 = vmatprep.subr.bf16.mxu0 %v4398_v10  ;;  %2464 = vmatprep.subr.bf16.mxu1 %v4401_v11  ;;  %v4483_v10 = vld [vmem:[#allocation5 + $0xd0] ss:$8 sps:$4 sm:$0xff]   ;;  %v4488_v11 = vld [vmem:[#allocation5 + $0xe4] ss:$8 sps:$4 sm:$0xff]  }
 0x191   :  { %2132 = vmatmul.mubr.bf16.vlgmr.msra.gmra.mrb[16].mxu0 %v4861_v30  ;;  %2424 = vmatmul.mubr.bf16.vlgmr.msra.gmra.mrb[40].mxu1 %v4861_v30  ;;  %v4419_v30 = vld [vmem:[#allocation3 + $0x66c] ss:$16 sps:$4 sm:$0xff]  }
 0x192   :  { %2173 = vmatpush1.bf16.msra.mxu0 %v4396_v13  ;;  %2465 = vmatpush1.bf16.msra.mxu1 %v4399_v14  ;;  %v4486_v13 = vld [vmem:[#allocation5 + $0xe0] ss:$8 sps:$4 sm:$0xff]   ;;  %v4491_v14 = vld [vmem:[#allocation5 + $0xf4] ss:$8 sps:$4 sm:$0xff]  }
 0x193   :  { %2174 = vmatprep.subr.bf16.mxu0 %v4404_v2  ;;  %2466 = vmatprep.subr.bf16.mxu1 %v4407_v34  ;;  %v4489_v2 = vld [vmem:[#allocation5 + $0xf0] ss:$8 sps:$4 sm:$0xff]   ;;  %v4494_v34 = vld [vmem:[#allocation5 + $0x104] ss:$8 sps:$4 sm:$0xff]  }
 0x194   :  { %2141 = vmatprep.mubr.bf16.mxu0 %v4877_v17  ;;  %2433 = vmatprep.mubr.bf16.mxu1 %v4877_v17  ;;  %v4425_v17 = vld [vmem:[#allocation3 + $0x68c] ss:$16 sps:$4 sm:$0xff]  }
 0x196   :  { %2175 = vmatpush1.bf16.msra.mxu0 %v4402_v15  ;;  %2467 = vmatpush1.bf16.msra.mxu1 %v4405_v18  ;;  %v4540_v15 = vld [vmem:[%s5173_s7 + $0x40] sm:$0xff]  }
 0x197   :  { %2176 = vmatprep.subr.bf16.mxu0 %v4410_v39  ;;  %2468 = vmatprep.subr.bf16.mxu1 %v4413_v19  ;;  %v4541_v18 = vld [vmem:[%s5173_s7] sm:$0xff]   ;;  %v4542_v39 = vld [vmem:[%s5173_s7 + $0x48] sm:$0xff]  }
 0x198   :  { %v4543_v19 = vld [vmem:[%s5173_s7 + $0x8] sm:$0xff]  }
 0x199   :  { %2142 = vmatmul.mubr.bf16.gmra.mrb[20].mxu0 %v4873_v12  ;;  %2434 = vmatmul.mubr.bf16.gmra.mrb[44].mxu1 %v4873_v12  ;;  %v4431_v12 = vld [vmem:[#allocation3 + $0x6ac] ss:$16 sps:$4 sm:$0xff]  }
 0x19a   :  { %2177 = vmatpush1.bf16.msra.mxu0 %v4408_v20  ;;  %2469 = vmatpush1.bf16.msra.mxu1 %v4411_v22  ;;  %v4544_v20 = vld [vmem:[%s5173_s7 + $0x50] sm:$0xff]  }
 0x19b   :  { %2178 = vmatprep.subr.bf16.mxu0 %v4416_v28  ;;  %2470 = vmatprep.subr.bf16.mxu1 %v4419_v30  ;;  %v4545_v22 = vld [vmem:[%s5173_s7 + $0x10] sm:$0xff]   ;;  %v4546_v28 = vld [vmem:[%s5173_s7 + $0x58] sm:$0xff]  }
 0x19c   :  { %2151 = vmatprep.mubr.bf16.mxu0 %v4900_v0  ;;  %2443 = vmatprep.mubr.bf16.mxu1 %v4900_v0  ;;  %v4437_v0 = vld [vmem:[#allocation3 + $0x6cc] ss:$16 sps:$4 sm:$0xff]  }
 0x19d   :  { %v4547_v30 = vld [vmem:[%s5173_s7 + $0x18] sm:$0xff]  }
 0x19e   :  { %2179 = vmatpush1.bf16.msra.mxu0 %v4414_v23  ;;  %2471 = vmatpush1.bf16.msra.mxu1 %v4417_v24  ;;  %v4548_v23 = vld [vmem:[%s5173_s7 + $0x60] sm:$0xff]  }
 0x19f   :  { %2180 = vmatprep.subr.bf16.mxu0 %v4422_v25  ;;  %2472 = vmatprep.subr.bf16.mxu1 %v4425_v17  ;;  %v4549_v24 = vld [vmem:[%s5173_s7 + $0x20] sm:$0xff]   ;;  %v4550_v25 = vld [vmem:[%s5173_s7 + $0x68] sm:$0xff]  }
 0x1a0   :  { %v811_v17 = vld [vmem:[%s5170_s4] sm:$0xf] }
 0x1a1   :  { %2152 = vmatmul.mubr.bf16.gmra.mrb[24].mxu0 %v4897_v59  ;;  %2444 = vmatmul.mubr.bf16.gmra.mrb[48].mxu1 %v4897_v59  ;;  %v4443_v59 = vld [vmem:[#allocation3 + $0x6ec] ss:$16 sps:$4 sm:$0xff]  }
 0x1a2   :  { %2181 = vmatpush1.bf16.msra.mxu0 %v4420_v6  ;;  %2473 = vmatpush1.bf16.msra.mxu1 %v4423_v26  ;;  %v5032_v6 = vrot.slane %v811_v17, %v4823_v33  ;;  %v5036_v26 = vrot.slane %v811_v17, %v109_v16 }
 0x1a3   :  { %2182 = vmatprep.subr.bf16.mxu0 %v4428_v31  ;;  %2474 = vmatprep.subr.bf16.mxu1 %v4431_v12  ;;  %v5039_v31 = vrot.slane %v811_v17, %v4831_v35  ;;  %v5043_v12 = vrot.slane %v811_v17, %v113_v21 }
 0x1a4   :  { %2161 = vmatprep.mubr.bf16.mxu0 %v4915_v49  ;;  %2453 = vmatprep.mubr.bf16.mxu1 %v4915_v49  ;;  %v4444_v49 = vld [vmem:[#allocation5] ss:$8 sps:$4 sm:$0xff]  }
 0x1a6   :  { %2183 = vmatpush1.bf16.msra.mxu0 %v4426_v38  ;;  %2475 = vmatpush1.bf16.msra.mxu1 %v4429_v3 }
 0x1a7   :  { %2184 = vmatprep.subr.bf16.mxu0 %v4434_v42  ;;  %2476 = vmatprep.subr.bf16.mxu1 %v4437_v0 }
 0x1a9   :  { %2162 = vmatmul.mubr.bf16.gmra.mrb[28].mxu0 %v4912_v47  ;;  %2454 = vmatmul.mubr.bf16.gmra.mrb[52].mxu1 %v4912_v47  ;;  %v4447_v47 = vld [vmem:[#allocation5 + $0x10] ss:$8 sps:$4 sm:$0xff]  }
 0x1aa   :  { %2185 = vmatpush1.bf16.msra.mxu0 %v4432_v43  ;;  %2477 = vmatpush1.bf16.msra.mxu1 %v4435_v44 }
 0x1ab   :  { %2186 = vmatprep.subr.bf16.mxu0 %v4440_v36  ;;  %2478 = vmatprep.subr.bf16.mxu1 %v4443_v59 }
 0x1ac   :  { %2204 = vmatprep.mubr.bf16.mxu0 %v4614_v1  ;;  %2496 = vmatprep.mubr.bf16.mxu1 %v4614_v1 }
 0x1ae   :  { %2187 = vmatpush1.bf16.msra.mxu0 %v4438_v52  ;;  %2479 = vmatpush1.bf16.msra.mxu1 %v4441_v41 }
 0x1af   :  { %2981 = vmatprep.subr.bf16.mxu0 %v4446_v45  ;;  %3845 = vmatprep.subr.bf16.mxu1 %v4540_v15  ;;  %v4495_v15 = vld [vmem:[#allocation5 + $0x110] ss:$8 sps:$4 sm:$0xff]  }
 0x1b1   :  { %2205 = vmatmul.mubr.bf16.vlgmr.msra.gmra.mrb[16].mxu0 %v4943_v40  ;;  %2497 = vmatmul.mubr.bf16.vlgmr.msra.gmra.mrb[40].mxu1 %v4943_v40  ;;  %v4453_v40 = vld [vmem:[#allocation5 + $0x30] ss:$8 sps:$4 sm:$0xff]  }
 0x1b2   :  { %2214 = vmatprep.mubr.bf16.mxu0 %v4614_v1  ;;  %2506 = vmatprep.mubr.bf16.mxu1 %v4614_v1 }
 0x1b3   :  { %2982 = vmatpush1.bf16.msra.mxu0 %v4444_v49  ;;  %3846 = vmatpush3.bf16.msra.mxu1 %v4541_v18 }
 0x1b4   :  { %2983 = vmatprep.subr.bf16.mxu0 %v4449_v54  ;;  %3847 = vmatprep.subr.bf16.mxu1 %v4542_v39 }
 0x1b7   :  { %2984 = vmatpush1.bf16.msra.mxu0 %v4447_v47  ;;  %3848 = vmatpush3.bf16.msra.mxu1 %v4543_v19 }
 0x1b8   :  { %2985 = vmatprep.subr.bf16.mxu0 %v4452_v48  ;;  %3849 = vmatprep.subr.bf16.mxu1 %v4544_v20 }
 0x1b9   :  { %2215 = vmatmul.mubr.bf16.gmra.mrb[20].mxu0 %v4941_v27  ;;  %2507 = vmatmul.mubr.bf16.gmra.mrb[44].mxu1 %v4941_v27  ;;  %v4459_v27 = vld [vmem:[#allocation5 + $0x50] ss:$8 sps:$4 sm:$0xff]  }
 0x1ba   :  { %2224 = vmatprep.mubr.bf16.mxu0 %v4614_v1  ;;  %2516 = vmatprep.mubr.bf16.mxu1 %v4614_v1 }
 0x1bb   :  { %2986 = vmatpush1.bf16.msra.mxu0 %v4450_v50  ;;  %3850 = vmatpush3.bf16.msra.mxu1 %v4545_v22  ;;  %v4500_v22 = vld [vmem:[#allocation5 + $0x124] ss:$8 sps:$4 sm:$0xff]  }
 0x1bc   :  { %2987 = vmatprep.subr.bf16.mxu0 %v4455_v51  ;;  %3851 = vmatprep.subr.bf16.mxu1 %v4546_v28 }
 0x1bf   :  { %2988 = vmatpush1.bf16.msra.mxu0 %v4453_v40  ;;  %3852 = vmatpush3.bf16.msra.mxu1 %v4547_v30 }
 0x1c0   :  { %2989 = vmatprep.subr.bf16.mxu0 %v4458_v53  ;;  %3853 = vmatprep.subr.bf16.mxu1 %v4548_v23 }
 0x1c1   :  { %2225 = vmatmul.mubr.bf16.gmra.mrb[24].mxu0 %v4951_v7  ;;  %2517 = vmatmul.mubr.bf16.gmra.mrb[48].mxu1 %v4951_v7  ;;  %v4470_v7 = vld [vmem:[#allocation5 + $0x84] ss:$8 sps:$4 sm:$0xff]  }
 0x1c2   :  { %2234 = vmatprep.mubr.bf16.mxu0 %v4614_v1  ;;  %2526 = vmatprep.mubr.bf16.mxu1 %v4614_v1  ;;  %v4473_v1 = vld [vmem:[#allocation5 + $0x94] ss:$8 sps:$4 sm:$0xff]  }
 0x1c3   :  { %2990 = vmatpush1.bf16.msra.mxu0 %v4456_v55  ;;  %3854 = vmatpush3.bf16.msra.mxu1 %v4549_v24 }
 0x1c4   :  { %2991 = vmatprep.subr.bf16.mxu0 %v4461_v56  ;;  %3855 = vmatprep.subr.bf16.mxu1 %v4550_v25 }
 0x1c7   :  { %2992 = vmatpush1.bf16.msra.mxu0 %v4459_v27 }
 0x1c8   :  { %2993 = vmatprep.subr.bf16.mxu0 %v4464_v57 }
 0x1c9   :  { %2235 = vmatmul.mubr.bf16.gmra.mrb[28].mxu0 %v4949_v29  ;;  %2527 = vmatmul.mubr.bf16.gmra.mrb[52].mxu1 %v4949_v29  ;;  %v4482_v29 = vld [vmem:[#allocation5 + $0xc4] ss:$8 sps:$4 sm:$0xff]  }
 0x1cb   :  { %2994 = vmatpush1.bf16.msra.mxu0 %v4462_v58 }
 0x1cc   :  { %2995 = vmatprep.subr.bf16.mxu0 %v4467_v60 }
 0x1cf   :  { %2996 = vmatpush1.bf16.msra.mxu0 %v4465_v61 }
 0x1d0   :  { %2997 = vmatprep.subr.bf16.mxu0 %v4470_v7 }
 0x1d3   :  { %2998 = vmatpush1.bf16.msra.mxu0 %v4468_v63  ;;  %v4492_v63 = vld [vmem:[#allocation5 + $0x100] ss:$8 sps:$4 sm:$0xff]  }
 0x1d4   :  { %2999 = vmatprep.subr.bf16.mxu0 %v4473_v1 }
 0x1d7   :  { %3000 = vmatpush1.bf16.msra.mxu0 %v4471_v46 }
 0x1d8   :  { %3001 = vmatprep.subr.bf16.mxu0 %v4476_v4 }
 0x1db   :  { %3002 = vmatpush1.bf16.msra.mxu0 %v4474_v62 }
 0x1dc   :  { %3003 = vmatprep.subr.bf16.mxu0 %v4479_v37  ;;  %v4497_v37 = vld [vmem:[#allocation5 + $0x114] ss:$8 sps:$4 sm:$0xff]  }
 0x1df   :  { %3004 = vmatpush1.bf16.msra.mxu0 %v4477_v5 }
 0x1e0   :  { %3005 = vmatprep.subr.bf16.mxu0 %v4482_v29 }
 0x1e3   :  { %3006 = vmatpush1.bf16.msra.mxu0 %v4480_v8 }
 0x1e4   :  { %3007 = vmatprep.subr.bf16.mxu0 %v4485_v9 }
 0x1e7   :  { %3008 = vmatpush1.bf16.msra.mxu0 %v4483_v10 }
 0x1e8   :  { %3009 = vmatprep.subr.bf16.mxu0 %v4488_v11 }
 0x1eb   :  { %3010 = vmatpush1.bf16.msra.mxu0 %v4486_v13 }
 0x1ec   :  { %3011 = vmatprep.subr.bf16.mxu0 %v4491_v14 }
 0x1ef   :  { %3012 = vmatpush1.bf16.msra.mxu0 %v4489_v2 }
 0x1f0   :  { %3054 = vmatprep.subr.bf16.mxu0 %v4494_v34 }
 0x284   :  { %v2206_v38 = vpop.f32.mrb[16].mxu0  ;;  %v2498_v3 = vpop.f32.mrb[40].mxu1 }
 0x285   :  { %v3921_v42 = vadd.f32 %v2206_v38, %v5032_v6  ;;  %v3937_v0 = vadd.f32 %v2498_v3, %v5036_v26  ;;  %v2208_v43 = vpop.f32.mrb[17].mxu0  ;;  %v2500_v44 = vpop.f32.mrb[41].mxu1 }
 0x286   :  { %v3922_v36 = vadd.f32 %v2208_v43, %v5039_v31  ;;  %v3938_v16 = vadd.f32 %v2500_v44, %v5043_v12  ;;  %v2210_v59 = vpop.f32.mrb[18].mxu0  ;;  %v2502_v52 = vpop.f32.mrb[42].mxu1  ;;  %v4498_v43 = vld [vmem:[#allocation5 + $0x120] ss:$8 sps:$4 sm:$0xff]  }
 0x287   :  { %v3923_v41 = vadd.f32 %v2210_v59, %v5032_v6  ;;  %v3939_v32 = vadd.f32 %v2502_v52, %v5036_v26  ;;  %v2212_v21 = vpop.f32.mrb[19].mxu0  ;;  %v2504_v45 = vpop.f32.mrb[43].mxu1  ;;  %v2537_v47 = vmax.f32 %v3921_v42, 0.0  ;;  %v2539_v48 = vmax.f32 %v3937_v0, 0.0  ;;  %v4503_v52 = vld [vmem:[#allocation5 + $0x134] ss:$8 sps:$4 sm:$0xff]  }
 0x288   :  { %v3924_v49 = vadd.f32 %v2212_v21, %v5039_v31  ;;  %v3940_v54 = vadd.f32 %v2504_v45, %v5043_v12  ;;  %v2538_v40 = vmax.f32 %v3922_v36, 0.0  ;;  %v2540_v53 = vmax.f32 %v3938_v16, 0.0 }
 0x289   :  { %v2541_v50 = vmax.f32 %v3923_v41, 0.0  ;;  %v2543_v51 = vmax.f32 %v3939_v32, 0.0 }
 0x28a   :  { %v2542_v55 = vmax.f32 %v3924_v49, 0.0  ;;  %v2544_v56 = vmax.f32 %v3940_v54, 0.0 }
 0x28b   :  { %v2569_v27 = vpack.c.bf16 %v2541_v50, %v2537_v47  ;;  %v5053_v57 = vpack.c.bf16 %v2543_v51, %v2539_v48 }
 0x28c   :  { %v2570_v58 = vpack.c.bf16 %v2542_v55, %v2538_v40  ;;  %v5055_v60 = vpack.c.bf16 %v2544_v56, %v2540_v53  ;;  %v2216_v61 = vpop.f32.mrb[20].mxu0  ;;  %v2508_v7 = vpop.f32.mrb[44].mxu1  ;;  %v4501_v40 = vld [vmem:[#allocation5 + $0x130] ss:$8 sps:$4 sm:$0xff]  }
 0x28d   :  { %v3925_v1 = vadd.f32 %v2216_v61, %v5032_v6  ;;  %v3941_v46 = vadd.f32 %v2508_v7, %v5036_v26  ;;  %v2218_v4 = vpop.f32.mrb[21].mxu0  ;;  %v2510_v62 = vpop.f32.mrb[45].mxu1 }
 0x28e   :  { %v3926_v5 = vadd.f32 %v2218_v4, %v5039_v31  ;;  %v3942_v29 = vadd.f32 %v2510_v62, %v5043_v12  ;;  %v2220_v8 = vpop.f32.mrb[22].mxu0  ;;  %v2512_v9 = vpop.f32.mrb[46].mxu1  ;;  %3013 = vmatprep.mubr.bf16.mxu0 %v2570_v58  ;;  %v4506_v58 = vld [vmem:[#allocation5 + $0x144] ss:$8 sps:$4 sm:$0xff]  }
 0x28f   :  { %v3927_v10 = vadd.f32 %v2220_v8, %v5032_v6  ;;  %v3943_v11 = vadd.f32 %v2512_v9, %v5036_v26  ;;  %v2222_v13 = vpop.f32.mrb[23].mxu0  ;;  %v2514_v14 = vpop.f32.mrb[47].mxu1  ;;  %3014 = vmatmul.mubr.bf16.vlgmr.msra.gmra.mrb[32].mxu0 %v2569_v27  ;;  %v2545_v18 = vmax.f32 %v3925_v1, 0.0  ;;  %v2547_v39 = vmax.f32 %v3941_v46, 0.0  ;;  %v4504_v8 = vld [vmem:[#allocation5 + $0x140] ss:$8 sps:$4 sm:$0xff]  }
 0x290   :  { %v3928_v2 = vadd.f32 %v2222_v13, %v5039_v31  ;;  %v3944_v34 = vadd.f32 %v2514_v14, %v5043_v12  ;;  %3055 = vmatpush1.bf16.msra.mxu0 %v4492_v63  ;;  %v2546_v28 = vmax.f32 %v3926_v5, 0.0  ;;  %v2548_v30 = vmax.f32 %v3942_v29, 0.0  ;;  %v4509_v14 = vld [vmem:[#allocation5 + $0x154] ss:$8 sps:$4 sm:$0xff]  }
 0x291   :  { %v2549_v19 = vmax.f32 %v3927_v10, 0.0  ;;  %v2551_v20 = vmax.f32 %v3943_v11, 0.0  ;;  %3056 = vmatprep.subr.bf16.mxu0 %v4497_v37 }
 0x292   :  { %v2550_v23 = vmax.f32 %v3928_v2, 0.0  ;;  %v2552_v24 = vmax.f32 %v3944_v34, 0.0 }
 0x293   :  { %v2573_v25 = vpack.c.bf16 %v2549_v19, %v2545_v18  ;;  %v5065_v17 = vpack.c.bf16 %v2551_v20, %v2547_v39 }
 0x294   :  { %v2574_v38 = vpack.c.bf16 %v2550_v23, %v2546_v28  ;;  %v5067_v3 = vpack.c.bf16 %v2552_v24, %v2548_v30  ;;  %3057 = vmatpush1.bf16.msra.mxu0 %v4495_v15  ;;  %v2226_v42 = vpop.f32.mrb[24].mxu0  ;;  %v2518_v0 = vpop.f32.mrb[48].mxu1  ;;  %v4507_v23 = vld [vmem:[#allocation5 + $0x150] ss:$8 sps:$4 sm:$0xff]  }
 0x295   :  { %v3929_v44 = vadd.f32 %v2226_v42, %v5032_v6  ;;  %v3945_v36 = vadd.f32 %v2518_v0, %v5036_v26  ;;  %v2228_v16 = vpop.f32.mrb[25].mxu0  ;;  %v2520_v59 = vpop.f32.mrb[49].mxu1  ;;  %3058 = vmatprep.subr.bf16.mxu0 %v4500_v22  ;;  %v4512_v0 = vld [vmem:[#allocation5 + $0x164] ss:$8 sps:$4 sm:$0xff]  }
 0x296   :  { %v3930_v41 = vadd.f32 %v2228_v16, %v5039_v31  ;;  %v3946_v32 = vadd.f32 %v2520_v59, %v5043_v12  ;;  %v2230_v21 = vpop.f32.mrb[26].mxu0  ;;  %v2522_v45 = vpop.f32.mrb[50].mxu1  ;;  %3023 = vmatprep.mubr.bf16.mxu0 %v2574_v38 }
 0x297   :  { %v3931_v49 = vadd.f32 %v2230_v21, %v5032_v6  ;;  %v3947_v54 = vadd.f32 %v2522_v45, %v5036_v26  ;;  %v2232_v47 = vpop.f32.mrb[27].mxu0  ;;  %v2524_v48 = vpop.f32.mrb[51].mxu1  ;;  %3024 = vmatmul.mubr.bf16.gmra.mrb[36].mxu0 %v2573_v25  ;;  %v2553_v53 = vmax.f32 %v3929_v44, 0.0  ;;  %v2555_v55 = vmax.f32 %v3945_v36, 0.0  ;;  %v4516_v21 = vld [vmem:[#allocation5 + $0x180] ss:$8 sps:$4 sm:$0xff]  }
 0x298   :  { %v3932_v50 = vadd.f32 %v2232_v47, %v5039_v31  ;;  %v3948_v51 = vadd.f32 %v2524_v48, %v5043_v12  ;;  %3059 = vmatpush1.bf16.msra.mxu0 %v4498_v43  ;;  %v2554_v61 = vmax.f32 %v3930_v41, 0.0  ;;  %v2556_v7 = vmax.f32 %v3946_v32, 0.0  ;;  %v4513_v41 = vld [vmem:[#allocation5 + $0x170] ss:$8 sps:$4 sm:$0xff]   ;;  %v4518_v32 = vld [vmem:[#allocation5 + $0x184] ss:$8 sps:$4 sm:$0xff]  }
 0x299   :  { %v2557_v56 = vmax.f32 %v3931_v49, 0.0  ;;  %v2559_v27 = vmax.f32 %v3947_v54, 0.0  ;;  %3060 = vmatprep.subr.bf16.mxu0 %v4503_v52  ;;  %v4521_v45 = vld [vmem:[#allocation5 + $0x194] ss:$8 sps:$4 sm:$0xff]   ;;  %v4519_v49 = vld [vmem:[#allocation5 + $0x190] ss:$8 sps:$4 sm:$0xff]  }
 0x29a   :  { %v2558_v63 = vmax.f32 %v3932_v50, 0.0  ;;  %v2560_v1 = vmax.f32 %v3948_v51, 0.0  ;;  %v4524_v54 = vld [vmem:[#allocation5 + $0x1a4] ss:$8 sps:$4 sm:$0xff]   ;;  %v4522_v47 = vld [vmem:[#allocation5 + $0x1a0] ss:$8 sps:$4 sm:$0xff]  }
 0x29b   :  { %v2577_v46 = vpack.c.bf16 %v2557_v56, %v2553_v53  ;;  %v5077_v4 = vpack.c.bf16 %v2559_v27, %v2555_v55  ;;  %v4527_v48 = vld [vmem:[#allocation5 + $0x1b4] ss:$8 sps:$4 sm:$0xff]   ;;  %v4525_v50 = vld [vmem:[#allocation5 + $0x1b0] ss:$8 sps:$4 sm:$0xff]   ;;  %v4530_v51 = vld [vmem:[#allocation5 + $0x1c4] ss:$8 sps:$4 sm:$0xff]  }
 0x29c   :  { %v2578_v62 = vpack.c.bf16 %v2558_v63, %v2554_v61  ;;  %v5079_v37 = vpack.c.bf16 %v2560_v1, %v2556_v7  ;;  %3061 = vmatpush1.bf16.msra.mxu0 %v4501_v40  ;;  %v2236_v5 = vpop.f32.mrb[28].mxu0  ;;  %v2528_v29 = vpop.f32.mrb[52].mxu1  ;;  %v4533_v40 = vld [vmem:[#allocation5 + $0x1d4] ss:$8 sps:$4 sm:$0xff]   ;;  %v4531_v53 = vld [vmem:[#allocation5 + $0x1d0] ss:$8 sps:$4 sm:$0xff]  }
 0x29d   :  { %v3933_v9 = vadd.f32 %v2236_v5, %v5032_v6  ;;  %v3949_v10 = vadd.f32 %v2528_v29, %v5036_v26  ;;  %v2238_v11 = vpop.f32.mrb[29].mxu0  ;;  %v2530_v13 = vpop.f32.mrb[53].mxu1  ;;  %3062 = vmatprep.subr.bf16.mxu0 %v4506_v58  ;;  %v4536_v55 = vld [vmem:[#allocation5 + $0x1e4] ss:$8 sps:$4 sm:$0xff]   ;;  %v4534_v56 = vld [vmem:[#allocation5 + $0x1e0] ss:$8 sps:$4 sm:$0xff]  }
 0x29e   :  { %v3934_v2 = vadd.f32 %v2238_v11, %v5039_v31  ;;  %v3950_v34 = vadd.f32 %v2530_v13, %v5043_v12  ;;  %v2240_v15 = vpop.f32.mrb[30].mxu0  ;;  %v2532_v18 = vpop.f32.mrb[54].mxu1  ;;  %3033 = vmatprep.mubr.bf16.mxu0 %v2578_v62  ;;  %v4539_v27 = vld [vmem:[#allocation5 + $0x1f4] ss:$8 sps:$4 sm:$0xff]   ;;  %v4537_v58 = vld [vmem:[#allocation5 + $0x1f0] ss:$8 sps:$4 sm:$0xff]  }
 0x29f   :  { %v3935_v39 = vadd.f32 %v2240_v15, %v5032_v6  ;;  %v3951_v19 = vadd.f32 %v2532_v18, %v5036_v26  ;;  %v2242_v20 = vpop.f32.mrb[31].mxu0  ;;  %v2534_v22 = vpop.f32.mrb[55].mxu1  ;;  %3034 = vmatmul.mubr.bf16.gmra.mrb[40].mxu0 %v2577_v46  ;;  %v2561_v24 = vmax.f32 %v3933_v9, 0.0  ;;  %v2563_v25 = vmax.f32 %v3949_v10, 0.0  ;;  %v4551_v61 = vld [vmem:[%s5173_s7 + $0x28] sm:$0xff]   ;;  %v4552_v7 = vld [vmem:[%s5173_s7 + $0x70] sm:$0xff]  }
 0x2a0   :  { %v3936_v28 = vadd.f32 %v2242_v20, %v5039_v31  ;;  %v3952_v30 = vadd.f32 %v2534_v22, %v5043_v12  ;;  %3063 = vmatpush1.bf16.msra.mxu0 %v4504_v8  ;;  %v2562_v43 = vmax.f32 %v3934_v2, 0.0  ;;  %v2564_v44 = vmax.f32 %v3950_v34, 0.0  ;;  %v4510_v31 = vld [vmem:[#allocation5 + $0x160] ss:$8 sps:$4 sm:$0xff]   ;;  %v4515_v12 = vld [vmem:[#allocation5 + $0x174] ss:$8 sps:$4 sm:$0xff]   ;;  %3856 = vmatpush3.bf16.msra.mxu1 %v4551_v61 }
 0x2a1   :  { %v2565_v38 = vmax.f32 %v3935_v39, 0.0  ;;  %v2567_v42 = vmax.f32 %v3951_v19, 0.0  ;;  %3064 = vmatprep.subr.bf16.mxu0 %v4509_v14  ;;  %3857 = vmatprep.subr.bf16.mxu1 %v4552_v7  ;;  %v4556_v63 = vld [vmem:[%s5175_s9] sm:$0xff]   ;;  %v4557_v7 = vld [vmem:[%s5175_s9 + $0x8] sm:$0xff]  }
 0x2a2   :  { %v2566_v6 = vmax.f32 %v3936_v28, 0.0  ;;  %v2568_v36 = vmax.f32 %v3952_v30, 0.0  ;;  %v2649_v1 = vld [vmem:[%s5172_s6] sm:$0x3] }
 0x2a3   :  { %v2581_v26 = vpack.c.bf16 %v2565_v38, %v2561_v24  ;;  %v2583_v16 = vpack.c.bf16 %v2567_v42, %v2563_v25  ;;  %v2654_v46 = vrot.slane %v2649_v1, %v4823_v33 }
 0x2a4   :  { %v2582_v59 = vpack.c.bf16 %v2566_v6, %v2562_v43  ;;  %v2584_v52 = vpack.c.bf16 %v2568_v36, %v2564_v44  ;;  %3065 = vmatpush1.bf16.msra.mxu0 %v4507_v23 }
 0x2a5   :  { %3066 = vmatprep.subr.bf16.mxu0 %v4512_v0 }
 0x2a6   :  { %3043 = vmatprep.mubr.bf16.mxu0 %v2582_v59 }
 0x2a7   :  { %3044 = vmatmul.mubr.bf16.gmra.mrb[44].mxu0 %v2581_v26 }
 0x2a8   :  { %3067 = vmatpush1.bf16.msra.mxu0 %v4510_v31  ;;  %3086 = vmatprep.mubr.bf16.mxu0 %v5055_v60  ;;  %v4528_v60 = vld [vmem:[#allocation5 + $0x1c0] ss:$8 sps:$4 sm:$0xff]  }
 0x2a9   :  { %3068 = vmatprep.subr.bf16.mxu0 %v4515_v12 }
 0x2ac   :  { %3069 = vmatpush1.bf16.msra.mxu0 %v4513_v41 }
 0x2ad   :  { %3070 = vmatprep.subr.bf16.mxu0 %v4518_v32 }
 0x2b0   :  { %3071 = vmatpush1.bf16.msra.mxu0 %v4516_v21 }
 0x2b1   :  { %3072 = vmatprep.subr.bf16.mxu0 %v4521_v45 }
 0x2b4   :  { %3073 = vmatpush1.bf16.msra.mxu0 %v4519_v49 }
 0x2b5   :  { %3074 = vmatprep.subr.bf16.mxu0 %v4524_v54 }
 0x2b8   :  { %3075 = vmatpush1.bf16.msra.mxu0 %v4522_v47 }
 0x2b9   :  { %3076 = vmatprep.subr.bf16.mxu0 %v4527_v48 }
 0x2bc   :  { %3077 = vmatpush1.bf16.msra.mxu0 %v4525_v50 }
 0x2bd   :  { %3078 = vmatprep.subr.bf16.mxu0 %v4530_v51 }
 0x2c0   :  { %3079 = vmatpush1.bf16.msra.mxu0 %v4528_v60 }
 0x2c1   :  { %3080 = vmatprep.subr.bf16.mxu0 %v4533_v40 }
 0x2c4   :  { %3081 = vmatpush1.bf16.msra.mxu0 %v4531_v53 }
 0x2c5   :  { %3082 = vmatprep.subr.bf16.mxu0 %v4536_v55 }
 0x2c8   :  { %3083 = vmatpush1.bf16.msra.mxu0 %v4534_v56 }
 0x2c9   :  { %3084 = vmatprep.subr.bf16.mxu0 %v4539_v27 }
 0x2cc   :  { %3085 = vmatpush1.bf16.msra.mxu0 %v4537_v58 }
 0x2cf   :  { %3087 = vmatmul.mubr.bf16.vlgmr.msra.gmra.mrb[32].mxu0 %v5053_v57  ;;  %v4553_v57 = vld [vmem:[%s5173_s7 + $0x30] sm:$0xff]  }
 0x2d0   :  { %3096 = vmatprep.mubr.bf16.mxu0 %v5067_v3  ;;  %3858 = vmatpush3.bf16.msra.mxu1 %v4553_v57  ;;  %v4555_v3 = vld [vmem:[%s5173_s7 + $0x38] sm:$0xff]   ;;  %v4558_v57 = vld [vmem:[%s5175_s9 + $0x10] sm:$0xff]  }
 0x2d7   :  { %3097 = vmatmul.mubr.bf16.gmra.mrb[36].mxu0 %v5065_v17  ;;  %v4554_v17 = vld [vmem:[%s5173_s7 + $0x78] sm:$0xff]  }
 0x2d8   :  { %3106 = vmatprep.mubr.bf16.mxu0 %v5079_v37  ;;  %3859 = vmatprep.subr.bf16.mxu1 %v4554_v17  ;;  %v4559_v17 = vld [vmem:[%s5175_s9 + $0x18] sm:$0xff]  }
 0x2d9   :  { %3860 = vmatpush3.bf16.msra.mxu1 %v4555_v3 }
 0x2da   :  { %3905 = vmatprep.subr.bf16.mxu1 %v4556_v63 }
 0x2df   :  { %3107 = vmatmul.mubr.bf16.gmra.mrb[40].mxu0 %v5077_v4  ;;  %v2658_v4 = vrot.slane %v2649_v1, %v4831_v35 }
 0x2e0   :  { %3116 = vmatprep.mubr.bf16.mxu0 %v2584_v52 }
 0x2e7   :  { %3117 = vmatmul.mubr.bf16.gmra.mrb[44].mxu0 %v2583_v16 }
 0x3a2   :  { %v3088_v62 = vpop.f32.mrb[32].mxu0 }
 0x3a3   :  { %v3953_v37 = vadd.f32 %v3088_v62, %v2654_v46  ;;  %v3090_v5 = vpop.f32.mrb[33].mxu0 }
 0x3a4   :  { %v3954_v29 = vadd.f32 %v3090_v5, %v2658_v4  ;;  %v3092_v8 = vpop.f32.mrb[34].mxu0 }
 0x3a5   :  { %v3955_v9 = vadd.f32 %v3092_v8, %v2654_v46  ;;  %v3094_v10 = vpop.f32.mrb[35].mxu0  ;;  %v3127_v13 = vmax.f32 %v3953_v37, 0.0 }
 0x3a6   :  { %v3956_v11 = vadd.f32 %v3094_v10, %v2658_v4  ;;  %v3128_v2 = vmax.f32 %v3954_v29, 0.0 }
 0x3a7   :  { %v3129_v14 = vmax.f32 %v3955_v9, 0.0 }
 0x3a8   :  { %v3130_v34 = vmax.f32 %v3956_v11, 0.0 }
 0x3a9   :  { %v3143_v15 = vpack.c.bf16 %v3129_v14, %v3127_v13 }
 0x3aa   :  { %v3144_v18 = vpack.c.bf16 %v3130_v34, %v3128_v2  ;;  %v3098_v39 = vpop.f32.mrb[36].mxu0 }
 0x3ab   :  { %v3957_v19 = vadd.f32 %v3098_v39, %v2654_v46  ;;  %v3100_v20 = vpop.f32.mrb[37].mxu0 }
 0x3ac   :  { %v3958_v33 = vadd.f32 %v3100_v20, %v2658_v4  ;;  %v3102_v22 = vpop.f32.mrb[38].mxu0  ;;  %3318 = vmatprep.mubr.bf16.mxu1 %v3144_v18 }
 0x3ad   :  { %v3959_v35 = vadd.f32 %v3102_v22, %v2654_v46  ;;  %v3104_v28 = vpop.f32.mrb[39].mxu0  ;;  %3319 = vmatmul.mubr.bf16.vlgmr.msra.gmra.mrb[56].mxu1 %v3143_v15  ;;  %v3131_v23 = vmax.f32 %v3957_v19, 0.0 }
 0x3ae   :  { %v3960_v30 = vadd.f32 %v3104_v28, %v2658_v4  ;;  %3906 = vmatpush3.bf16.msra.mxu1 %v4556_v63  ;;  %v3132_v25 = vmax.f32 %v3958_v33, 0.0  ;;  %v3813_v63 = vld [vmem:[%s5174_s8] ss:$0 sm:$0xff] }
 0x3af   :  { %v3133_v24 = vmax.f32 %v3959_v35, 0.0  ;;  %3907 = vmatprep.subr.bf16.mxu1 %v4557_v7 }
 0x3b0   :  { %v3134_v38 = vmax.f32 %v3960_v30, 0.0 }
 0x3b1   :  { %v3145_v42 = vpack.c.bf16 %v3133_v24, %v3131_v23 }
 0x3b2   :  { %v3146_v0 = vpack.c.bf16 %v3134_v38, %v3132_v25  ;;  %v3108_v43 = vpop.f32.mrb[40].mxu0  ;;  %3908 = vmatpush3.bf16.msra.mxu1 %v4557_v7 }
 0x3b3   :  { %v3961_v44 = vadd.f32 %v3108_v43, %v2654_v46  ;;  %v3110_v6 = vpop.f32.mrb[41].mxu0  ;;  %3909 = vmatprep.subr.bf16.mxu1 %v4558_v57 }
 0x3b4   :  { %v3962_v36 = vadd.f32 %v3110_v6, %v2658_v4  ;;  %v3112_v26 = vpop.f32.mrb[42].mxu0  ;;  %3326 = vmatprep.mubr.bf16.mxu1 %v3146_v0 }
 0x3b5   :  { %v3963_v16 = vadd.f32 %v3112_v26, %v2654_v46  ;;  %v3114_v59 = vpop.f32.mrb[43].mxu0  ;;  %3327 = vmatmul.mubr.bf16.gmra.mrb[60].mxu1 %v3145_v42  ;;  %v3135_v31 = vmax.f32 %v3961_v44, 0.0 }
 0x3b6   :  { %v3964_v52 = vadd.f32 %v3114_v59, %v2658_v4  ;;  %v3136_v41 = vmax.f32 %v3962_v36, 0.0  ;;  %3910 = vmatpush3.bf16.msra.mxu1 %v4558_v57 }
 0x3b7   :  { %v3137_v12 = vmax.f32 %v3963_v16, 0.0  ;;  %3911 = vmatprep.subr.bf16.mxu1 %v4559_v17 }
 0x3b8   :  { %v3138_v32 = vmax.f32 %v3964_v52, 0.0 }
 0x3b9   :  { %v3147_v21 = vpack.c.bf16 %v3137_v12, %v3135_v31 }
 0x3ba   :  { %v3148_v45 = vpack.c.bf16 %v3138_v32, %v3136_v41  ;;  %v3118_v49 = vpop.f32.mrb[44].mxu0  ;;  %3912 = vmatpush3.bf16.msra.mxu1 %v4559_v17 }
 0x3bb   :  { %v3965_v54 = vadd.f32 %v3118_v49, %v2654_v46  ;;  %v3120_v47 = vpop.f32.mrb[45].mxu0 }
 0x3bc   :  { %v3966_v48 = vadd.f32 %v3120_v47, %v2658_v4  ;;  %v3122_v50 = vpop.f32.mrb[46].mxu0  ;;  %3334 = vmatprep.mubr.bf16.mxu1 %v3148_v45 }
 0x3bd   :  { %v3967_v51 = vadd.f32 %v3122_v50, %v2654_v46  ;;  %v3124_v60 = vpop.f32.mrb[47].mxu0  ;;  %3335 = vmatmul.mubr.bf16.gmra.mrb[64].mxu1 %v3147_v21  ;;  %v3139_v53 = vmax.f32 %v3965_v54, 0.0  ;;  %v3830_v21 = vld [vmem:[#allocation2] ss:$0 sm:$0xff] }
 0x3be   :  { %v3968_v40 = vadd.f32 %v3124_v60, %v2658_v4  ;;  %v3140_v56 = vmax.f32 %v3966_v48, 0.0 }
 0x3bf   :  { %v3141_v55 = vmax.f32 %v3967_v51, 0.0 }
 0x3c0   :  { %v3142_v27 = vmax.f32 %v3968_v40, 0.0 }
 0x3c1   :  { %v3149_v58 = vpack.c.bf16 %v3141_v55, %v3139_v53 }
 0x3c2   :  { %v3150_v61 = vpack.c.bf16 %v3142_v27, %v3140_v56 }
 0x3c4   :  { %3342 = vmatprep.mubr.bf16.mxu1 %v3150_v61 }
 0x3c5   :  { %3343 = vmatmul.mubr.bf16.gmra.mrb[68].mxu1 %v3149_v58 }
 0x480   :  { %v3861_v3 = vpop.f32.mrb[56].mxu1 }
 0x481   :  { %v3862_v1 = vpop.f32.mrb[57].mxu1 }
 0x482   :  { %v3863_v46 = vadd.f32 %v3862_v1, %v3861_v3  ;;  %v3864_v4 = vpop.f32.mrb[58].mxu1 }
 0x483   :  { %v3865_v62 = vpop.f32.mrb[59].mxu1 }
 0x484   :  { %v3321_v37 = vadd.f32 %v3863_v46, %v3813_v63  ;;  %v3866_v5 = vadd.f32 %v3865_v62, %v3864_v4 }
 0x486   :  { %v3324_v29 = vadd.f32 %v3866_v5, %v3813_v63  ;;  %v3351_v8 = vmax.f32 %v3321_v37, 0.0 }
 0x488   :  { %v3352_v9 = vmax.f32 %v3324_v29, 0.0  ;;  %v3867_v10 = vpop.f32.mrb[60].mxu1 }
 0x489   :  { %v3868_v11 = vpop.f32.mrb[61].mxu1 }
 0x48a   :  { %v3359_v13 = vpack.c.bf16 %v3352_v9, %v3351_v8  ;;  %v3869_v14 = vadd.f32 %v3868_v11, %v3867_v10  ;;  %v3870_v2 = vpop.f32.mrb[62].mxu1 }
 0x48b   :  { %v3871_v34 = vpop.f32.mrb[63].mxu1 }
 0x48c   :  { %v3329_v15 = vadd.f32 %v3869_v14, %v3813_v63  ;;  %v3872_v18 = vadd.f32 %v3871_v34, %v3870_v2  ;;  %3913 = vmatprep.mubr.msk.bf16.mxu1 %vm3402_vm1, %v3359_v13 }
 0x48e   :  { %v3332_v39 = vadd.f32 %v3872_v18, %v3813_v63  ;;  %v3353_v19 = vmax.f32 %v3329_v15, 0.0 }
 0x490   :  { %v3354_v20 = vmax.f32 %v3332_v39, 0.0  ;;  %v3873_v33 = vpop.f32.mrb[64].mxu1 }
 0x491   :  { %v3874_v22 = vpop.f32.mrb[65].mxu1 }
 0x492   :  { %v3360_v35 = vpack.c.bf16 %v3354_v20, %v3353_v19  ;;  %v3875_v28 = vadd.f32 %v3874_v22, %v3873_v33  ;;  %v3876_v30 = vpop.f32.mrb[66].mxu1 }
 0x493   :  { %v3877_v23 = vpop.f32.mrb[67].mxu1 }
 0x494   :  { %v3337_v24 = vadd.f32 %v3875_v28, %v3813_v63  ;;  %v3878_v25 = vadd.f32 %v3877_v23, %v3876_v30  ;;  %3914 = vmatmul.mubr.msk.bf16.vlgmr.msra.gmra.mrb[72].mxu1 %vm3402_vm1, %v3360_v35 }
 0x496   :  { %v3340_v38 = vadd.f32 %v3878_v25, %v3813_v63  ;;  %v3355_v42 = vmax.f32 %v3337_v24, 0.0 }
 0x498   :  { %v3356_v0 = vmax.f32 %v3340_v38, 0.0  ;;  %v3879_v43 = vpop.f32.mrb[68].mxu1 }
 0x499   :  { %v3880_v44 = vpop.f32.mrb[69].mxu1 }
 0x49a   :  { %v3361_v6 = vpack.c.bf16 %v3356_v0, %v3355_v42  ;;  %v3881_v36 = vadd.f32 %v3880_v44, %v3879_v43  ;;  %v3882_v26 = vpop.f32.mrb[70].mxu1 }
 0x49b   :  { %v3883_v16 = vpop.f32.mrb[71].mxu1 }
 0x49c   :  { %v3345_v59 = vadd.f32 %v3881_v36, %v3813_v63  ;;  %v3884_v52 = vadd.f32 %v3883_v16, %v3882_v26  ;;  %3917 = vmatprep.mubr.msk.bf16.mxu1 %vm3402_vm1, %v3361_v6 }
 0x49e   :  { %v3348_v31 = vadd.f32 %v3884_v52, %v3813_v63  ;;  %v3357_v12 = vmax.f32 %v3345_v59, 0.0 }
 0x4a0   :  { %v3358_v41 = vmax.f32 %v3348_v31, 0.0 }
 0x4a2   :  { %v3362_v32 = vpack.c.bf16 %v3358_v41, %v3357_v12 }
 0x4a4   :  { %3918 = vmatmul.mubr.msk.bf16.gmra.mrb[76].mxu1 %vm3402_vm1, %v3362_v32 }
 0x567   :  { %v3915_v45 = vpop.f32.mrb[72].mxu1 }
 0x568   :  { %v3458_v49 = vadd.f32 %v3915_v45, %v3830_v21  ;;  %v3449_v54 = vpop.f32.mrb[73].mxu1 }
 0x569   :  { %v3450_v47 = vadd.f32 %v3830_v21, %v3449_v54  ;;  %v3916_v48 = vpop.f32.mrb[74].mxu1 }
 0x56a   :  { %3483 = vst.msk [vmem:[%s5177_s11 + $0x10] sm:$0xff] %vm3480_vm2, %v3458_v49  ;;  %v3461_v50 = vadd.f32 %v3916_v48, %v3830_v21  ;;  %v3452_v51 = vpop.f32.mrb[75].mxu1 }
 0x56b   :  { %3481 = vst.msk [vmem:[%s5177_s11] sm:$0xff] %vm3480_vm2, %v3450_v47  ;;  %v3453_v60 = vadd.f32 %v3830_v21, %v3452_v51 }
 0x56c   :  { %3484 = vst.msk [vmem:[%s5177_s11 + $0x18] sm:$0xff] %vm3480_vm2, %v3461_v50 }
 0x56d   :  { %3482 = vst.msk [vmem:[%s5177_s11 + $0x8] sm:$0xff] %vm3480_vm2, %v3453_v60 }
 0x577   :  { %v3919_v40 = vpop.f32.mrb[76].mxu1 }
 0x578   :  { %v3474_v53 = vadd.f32 %v3919_v40, %v3830_v21  ;;  %v3465_v55 = vpop.f32.mrb[77].mxu1 }
 0x579   :  { %v3466_v56 = vadd.f32 %v3830_v21, %v3465_v55  ;;  %v3920_v27 = vpop.f32.mrb[78].mxu1 }
 0x57a   :  { %3487 = vst.msk [vmem:[%s5177_s11 + $0x30] sm:$0xff] %vm3480_vm2, %v3474_v53  ;;  %v3477_v58 = vadd.f32 %v3920_v27, %v3830_v21  ;;  %v3468_v61 = vpop.f32.mrb[79].mxu1 }
 0x57b   :  { %3485 = vst.msk [vmem:[%s5177_s11 + $0x20] sm:$0xff] %vm3480_vm2, %v3466_v56  ;;  %v3469_v7 = vadd.f32 %v3830_v21, %v3468_v61 }
 0x57c   :  { %3488 = vst.msk [vmem:[%s5177_s11 + $0x38] sm:$0xff] %vm3480_vm2, %v3477_v58 }
 0x57d   :  { %3486 = vst.msk [vmem:[%s5177_s11 + $0x28] sm:$0xff] %vm3480_vm2, %v3469_v7 }
 0x57e   :  { %3493 = vsyncpa [#allocation4], 1 }
 0x57f   :  { %3494 = vsyncpa [#allocation6], 1 }

</bundles_post_ra>
